<compile_context>
chip_gen: v5e
topology: v5e:2x2
jax: 0.10.0
libtpu: 0.0.40
codegen_flags: <defaults>
</compile_context>

<pallas_src>
import jax
import jax.numpy as jnp
from jax.experimental import pallas as pl
from jax.experimental.pallas import tpu as pltpu


# --------------------------------------------------------------------------
# Primary path: one direct HBM -> HBM DMA (no VMEM staging, any rank/shape).
# --------------------------------------------------------------------------
def _hbm_copy_kernel(m_ref, o_ref, sem):
    cp = pltpu.make_async_copy(m_ref, o_ref, sem)
    cp.start()
    cp.wait()


def _hbm_dma_copy(mask: jax.Array) -> jax.Array:
    return pl.pallas_call(
        _hbm_copy_kernel,
        out_shape=jax.ShapeDtypeStruct(mask.shape, mask.dtype),
        in_specs=[pl.BlockSpec(memory_space=pl.ANY)],
        out_specs=pl.BlockSpec(memory_space=pl.ANY),
        scratch_shapes=[pltpu.SemaphoreType.DMA(())],
    )(mask)


# --------------------------------------------------------------------------
# Fallback path: lane-dense, VMEM-budgeted tiled copy (BlockSpec pipeline).
# --------------------------------------------------------------------------
def _mask_tile_copy_kernel(m_ref, o_ref):
    o_ref[...] = m_ref[...]


def _default_vmem_budget() -> int:
    """Per-call VMEM budget for the tiled fallback (4 live buffers).

    8 MiB is safe everywhere (v5e's default scoped VMEM limit is only 16 MiB).
    On v6e/v7x (32 MiB default scoped limit) bump to 16 MiB -> 4 MiB/buffer,
    which amortizes the ~0.35 us per-grid-step overhead on v7x's 3.2 TB/s HBM.
    """
    budget = 8 << 20
    try:
        info = pltpu.get_tpu_info()
        name = (str(getattr(info, "chip_version", "")) +
                str(getattr(info, "name", ""))).lower()
        if any(tag in name for tag in ("v6", "6e", "v7", "7x")):
            budget = 16 << 20
    except Exception:
        pass  # unknown chip -> keep the conservative default
    return budget


def _choose_tiles(rows: int, cols: int, itemsize: int, vmem_budget_bytes: int):
    """Large, lane-dense blocks that fit the budget (in+out, double-buffered)."""
    sub = max(8, 32 // itemsize)                       # packed-sublane multiple
    per_buf = max(vmem_budget_bytes // 4, sub * 128 * itemsize)

    # Lane-dense last dim: full column extent if it fits (with >= `sub` rows),
    # otherwise the largest multiple of 128 lanes that does.
    if cols * itemsize * sub <= per_buf:
        tile_c = cols
    else:
        tile_c = max(128, min(cols, ((per_buf // (sub * itemsize)) // 128) * 128))

    max_r = per_buf // (tile_c * itemsize)
    tile_r = rows if max_r >= rows else max(sub, (max_r // sub) * sub)
    return tile_r, tile_c


def _fallback_tiled_copy(mask: jax.Array, vmem_budget_bytes: int) -> jax.Array:
    orig_shape = mask.shape
    itemsize = jnp.dtype(mask.dtype).itemsize
    total = mask.size

    # Flatten to a contiguous lane-dense 2-D slab when possible so every block
    # is a single-stride DMA and every store is an unmasked lane-dense vst.
    if total % 128 == 0:
        cols = 128
        while total % (cols * 2) == 0 and cols * 2 <= 4096:
            cols *= 2
        rows = total // cols
        x2d = mask.reshape(rows, cols)
    elif mask.ndim == 2:
        rows, cols = mask.shape
        x2d = mask
    else:
        rows, cols = 1, total
        x2d = mask.reshape(1, total)

    tile_r, tile_c = _choose_tiles(rows, cols, itemsize, vmem_budget_bytes)
    grid = (pl.cdiv(rows, tile_r), pl.cdiv(cols, tile_c))

    out2d = pl.pallas_call(
        _mask_tile_copy_kernel,
        out_shape=jax.ShapeDtypeStruct((rows, cols), mask.dtype),
        grid=grid,
        in_specs=[pl.BlockSpec((tile_r, tile_c), lambda i, j: (i, j))],
        out_specs=pl.BlockSpec((tile_r, tile_c), lambda i, j: (i, j)),
        compiler_params=pltpu.CompilerParams(
            dimension_semantics=("parallel", "parallel"),
        ),
    )(x2d)
    return out2d.reshape(orig_shape)


# --------------------------------------------------------------------------
# Public wrapper == PruningMaskGenerator.forward (mask pass-through).
# --------------------------------------------------------------------------
def pruning_mask_generator(mask: jax.Array,
                           *,
                           alias_input: bool = False,
                           min_pallas_bytes: int = 1 << 20,
                           vmem_budget_bytes: int | None = None) -> jax.Array:
    """Pallas implementation of PruningMaskGenerator.forward (mask pass-through).

    alias_input=True returns the input array itself: a genuine zero-cost
    identity (no kernel launch, no HBM traffic).  Otherwise the mask is
    copied with a single HBM->HBM DMA (tiny masks short-circuit to XLA).
    """
    if alias_input:
        return mask

    nbytes = mask.size * jnp.dtype(mask.dtype).itemsize
    if nbytes < min_pallas_bytes:
        # Kernel launch + pipeline setup would dwarf the HBM traffic here.
        return jnp.copy(mask)

    try:
        return _hbm_dma_copy(mask)
    except Exception:
        if vmem_budget_bytes is None:
            vmem_budget_bytes = _default_vmem_budget()
        return _fallback_tiled_copy(mask, vmem_budget_bytes)


if __name__ == "__main__":
    key = jax.random.PRNGKey(0)
    k1, k2, k3, k4, k5 = jax.random.split(key, 5)

    # 1) 2 MiB f32 weight-pruning mask -> direct HBM->HBM DMA path.
    m1 = (jax.random.uniform(k1, (1024, 512)) > 0.5).astype(jnp.float32)
    o1 = jax.block_until_ready(pruning_mask_generator(m1))
    assert o1.shape == m1.shape and o1.dtype == m1.dtype
    assert bool(jnp.all(o1 == m1))

    # 2) Odd 2-D shape (not a multiple of 8/128) forced through the kernel.
    m2 = (jax.random.uniform(k2, (100, 200)) > 0.5).astype(jnp.float32)
    o2 = jax.block_until_ready(pruning_mask_generator(m2, min_pallas_bytes=0))
    assert o2.shape == m2.shape and bool(jnp.all(o2 == m2))

    # 3) 4-D conv-style int8 mask (arbitrary rank, 4x fewer HBM bytes),
    #    forced through the kernel.
    m3 = (jax.random.uniform(k3, (8, 4, 3, 3)) > 0.5).astype(jnp.int8)
    o3 = jax.block_until_ready(pruning_mask_generator(m3, min_pallas_bytes=0))
    assert o3.shape == m3.shape and o3.dtype == m3.dtype
    assert bool(jnp.all(o3 == m3))

    # 4) Tiny 32x384 f32 mask (48 KiB) -> XLA short-circuit, no kernel launch.
    m4 = (jax.random.uniform(k4, (32, 384)) > 0.5).astype(jnp.float32)
    o4 = jax.block_until_ready(pruning_mask_generator(m4))
    assert o4.shape == m4.shape and bool(jnp.all(o4 == m4))

    # 5) alias_input=True -> genuine zero-cost identity (no pallas_call).
    m5 = (jax.random.uniform(k5, (64, 256)) > 0.5).astype(jnp.int8)
    o5 = jax.block_until_ready(pruning_mask_generator(m5, alias_input=True))
    assert o5.shape == m5.shape and bool(jnp.all(o5 == m5))

    # 6) Exercise the tiled VMEM fallback directly (bf16 -> 16-row sublane pack,
    #    flattened to a lane-dense slab) to keep it correct.
    m6 = (jax.random.uniform(k1, (256, 640)) > 0.5).astype(jnp.bfloat16)
    o6 = jax.block_until_ready(_fallback_tiled_copy(m6, 8 << 20))
    assert o6.shape == m6.shape and bool(jnp.all(o6 == m6))

    print("KERNEL_OK")
</pallas_src>

<mosaic_0001>
module attributes {stable_mosaic.version = 11 : i64} {
  func.func @_hbm_copy_kernel(%arg0: memref<1024x512xf32, #tpu.memory_space<any>>, %arg1: memref<1024x512xf32, #tpu.memory_space<any>>, %arg2: memref<!tpu.dma_semaphore, #tpu.memory_space<semaphore_mem>>) attributes {dimension_semantics = [], scalar_prefetch = 0 : i64, scratch_operands = 1 : i64, tpu.core_type = #tpu.core_type<tc>} {
    tpu.enqueue_dma source(%arg0 : memref<1024x512xf32, #tpu.memory_space<any>>) target(%arg1 : memref<1024x512xf32, #tpu.memory_space<any>>) target_semaphore(%arg2 : memref<!tpu.dma_semaphore, #tpu.memory_space<semaphore_mem>>)
    tpu.wait_dma2 semaphore(%arg2 : memref<!tpu.dma_semaphore, #tpu.memory_space<semaphore_mem>>) src(%arg0 : memref<1024x512xf32, #tpu.memory_space<any>>) dst(%arg1 : memref<1024x512xf32, #tpu.memory_space<any>>)
    return
  }
}

module attributes {stable_mosaic.version = 11 : i64} {
  func.func @_mask_tile_copy_kernel(%arg0: i32, %arg1: i32, %arg2: memref<128x4096xf32, #tpu.memory_space<vmem>>, %arg3: memref<128x4096xf32, #tpu.memory_space<vmem>>) attributes {dimension_semantics = [#tpu.dimension_semantics<parallel>, #tpu.dimension_semantics<parallel>], iteration_bounds = array<i64: 1, 1>, scalar_prefetch = 0 : i64, scratch_operands = 0 : i64, tpu.core_type = #tpu.core_type<tc>, window_params = [{transform_indices = @transform_0, window_bounds = array<i64: 128, 4096>}, {transform_indices = @transform_1, window_bounds = array<i64: 128, 4096>}]} {
    %c0 = arith.constant 0 : index
    %c0_0 = arith.constant 0 : index
    %0 = vector.load %arg2[%c0, %c0_0] : memref<128x4096xf32, #tpu.memory_space<vmem>>, vector<128x4096xf32>
    %c0_1 = arith.constant 0 : index
    %c0_2 = arith.constant 0 : index
    %1 = vector.load %arg3[%c0_1, %c0_2] : memref<128x4096xf32, #tpu.memory_space<vmem>>, vector<128x4096xf32>
    tpu.vector_store %arg3[%c0_1, %c0_2], %0 {strides = array<i32>} : memref<128x4096xf32, #tpu.memory_space<vmem>>, vector<128x4096xf32>,
    return
  }
  func.func @transform_0(%arg0: i32, %arg1: i32) -> (i32, i32) {
    %c0_i32 = arith.constant 0 : i32
    return %arg0, %arg1 : i32, i32
  }
  func.func @transform_1(%arg0: i32, %arg1: i32) -> (i32, i32) {
    %c0_i32 = arith.constant 0 : i32
    return %arg0, %arg1 : i32, i32
  }
}

</mosaic_0001>

<bundles_post_ra>
// kernel: tpu_custom_call.1
= control target key start
LH: loop header
LB: loop body
LE: loop exit
PB: predicated region body
PF: predicated region fallthrough
CT: control target
= control target key end

     0   :  { %s33_s12 = smov [#allocation2]   ;;  %s34_s13 = smov [#allocation3]   ;;  %s52_s0 = inlined_call_operand.hbm [shape: f32[1024,512], index: 0, kind: input, shape index: {}]   ;;  %s53_s1 = inlined_call_operand.hbm [shape: f32[1024,512], index: 1, kind: output, shape index: {}]  }
   0x1   :  { %s10_s8 = sshll.u32 %s52_s0, 4  ;;  %s12_s11 = sshll.u32 %s53_s1, 4  ;;  %s11_s8 = int_to_ptr.hbm [resolvable:$true] %s10_s8  ;;  %s13_s11 = int_to_ptr.hbm [resolvable:$true] %s12_s11 }
   0x2   :  { %s35_s14 = smov 0  }
   0x3   :  { %16 = dma.general %s11_s8, 65536, %s13_s11, %s33_s12, %s34_s13, [#allocation4], %s35_s14, 0  }
   0x4   :  { %31 = dma.done.wait [#allocation2], 65536 }
   0x5   :  { %32 = vsyncadd [#allocation2], 4294901760 }
   0x6   :  { %21 = vsyncmov [#allocation2] }
   0x9   :  { %s22_s15 = vpop.sfrf %21 }
   0xa   :  { %p27_p0 = scmp.ne.s32.totalorder %s22_s15, 0 }
   0xc   :  { %26 = shalt.err (%p27_p0)  }

// kernel: tpu_custom_call.1
= control target key start
LH: loop header
LB: loop body
LE: loop exit
PB: predicated region body
PF: predicated region fallthrough
CT: control target
= control target key end

     0   :  { %6 = vsyncpa [#allocation3], 0  ;;  %s1150_s0 = inlined_call_operand.hbm [shape: f32[128,4096], index: 0, kind: input, shape index: {}]   ;;  %s1151_s1 = inlined_call_operand.hbm [shape: f32[128,4096], index: 1, kind: output, shape index: {}]  }
   0x1   :  { %7 = vsyncpa [#allocation4], 0  ;;  %s12_s8 = sshll.u32 %s1150_s0, 4  ;;  %s1124_s9 = smov [#allocation2]   ;;  %s13_s8 = int_to_ptr.hbm [resolvable:$true] %s12_s8 }
   0x2   :  { %s14_s10 = sshll.u32 %s1124_s9, 4  ;;  %s1125_s11 = smov 4096   ;;  %s15_s10 = int_to_ptr.vmem [resolvable:$true] %s14_s10 }
   0x3   :  { %s1126_s12 = smov 256  }
   0x4   :  { %20 = dma.hbm_to_vmem [thread:$0]  %s13_s8, 65536, %s15_s10, [#allocation3], %s1125_s11, %s1125_s11, %s1126_s12  }
   0x5   :  { %1120 = dma.done.wait [#allocation3], 65536  }
   0x6   :  { %1121 = vsyncadd [#allocation3], 4294901760  ;;  %v25_v0 = vld [vmem:[#allocation2] sm:$0xff]  ;;  %v26_v1 = vld [vmem:[#allocation2 + $0x8] sm:$0xff]  ;;  %s1127_s0 = smov [#allocation5]   ;;  %s1055_s16 = sshll.u32 %s1151_s1, 4  ;;  %s1056_s16 = int_to_ptr.hbm [resolvable:$true] %s1055_s16 }
   0x7   :  { %v27_v2 = vld [vmem:[#allocation2 + $0x10] sm:$0xff]  ;;  %537 = vst [vmem:[#allocation5] sm:$0xff] %v25_v0  ;;  %v28_v3 = vld [vmem:[#allocation2 + $0x18] sm:$0xff]  ;;  %v29_v4 = vld [vmem:[#allocation2 + $0x20] sm:$0xff]  ;;  %s1053_s13 = sshll.u32 %s1127_s0, 4  ;;  %s1054_s13 = int_to_ptr.vmem [resolvable:$true] %s1053_s13 }
   0x8   :  { %538 = vst [vmem:[#allocation5 + $0x8] sm:$0xff] %v26_v1  ;;  %v30_v5 = vld [vmem:[#allocation2 + $0x28] sm:$0xff]  ;;  %v31_v6 = vld [vmem:[#allocation2 + $0x30] sm:$0xff]  ;;  %v32_v7 = vld [vmem:[#allocation2 + $0x38] sm:$0xff] }
   0x9   :  { %539 = vst [vmem:[#allocation5 + $0x10] sm:$0xff] %v27_v2  ;;  %v33_v8 = vld [vmem:[#allocation2 + $0x40] sm:$0xff]  ;;  %v34_v9 = vld [vmem:[#allocation2 + $0x48] sm:$0xff]  ;;  %v35_v10 = vld [vmem:[#allocation2 + $0x50] sm:$0xff] }
   0xa   :  { %540 = vst [vmem:[#allocation5 + $0x18] sm:$0xff] %v28_v3  ;;  %v36_v11 = vld [vmem:[#allocation2 + $0x58] sm:$0xff]  ;;  %v37_v12 = vld [vmem:[#allocation2 + $0x60] sm:$0xff]  ;;  %v38_v13 = vld [vmem:[#allocation2 + $0x68] sm:$0xff] }
   0xb   :  { %541 = vst [vmem:[#allocation5 + $0x20] sm:$0xff] %v29_v4  ;;  %v39_v14 = vld [vmem:[#allocation2 + $0x70] sm:$0xff]  ;;  %v40_v15 = vld [vmem:[#allocation2 + $0x78] sm:$0xff]  ;;  %v41_v16 = vld [vmem:[#allocation2 + $0x80] sm:$0xff] }
   0xc   :  { %542 = vst [vmem:[#allocation5 + $0x28] sm:$0xff] %v30_v5  ;;  %v42_v17 = vld [vmem:[#allocation2 + $0x88] sm:$0xff]  ;;  %v43_v18 = vld [vmem:[#allocation2 + $0x90] sm:$0xff]  ;;  %v44_v19 = vld [vmem:[#allocation2 + $0x98] sm:$0xff] }
   0xd   :  { %543 = vst [vmem:[#allocation5 + $0x30] sm:$0xff] %v31_v6  ;;  %v45_v20 = vld [vmem:[#allocation2 + $0xa0] sm:$0xff]  ;;  %v46_v21 = vld [vmem:[#allocation2 + $0xa8] sm:$0xff]  ;;  %v47_v22 = vld [vmem:[#allocation2 + $0xb0] sm:$0xff] }
   0xe   :  { %544 = vst [vmem:[#allocation5 + $0x38] sm:$0xff] %v32_v7  ;;  %v48_v23 = vld [vmem:[#allocation2 + $0xb8] sm:$0xff]  ;;  %v49_v24 = vld [vmem:[#allocation2 + $0xc0] sm:$0xff]  ;;  %v50_v25 = vld [vmem:[#allocation2 + $0xc8] sm:$0xff] }
   0xf   :  { %545 = vst [vmem:[#allocation5 + $0x40] sm:$0xff] %v33_v8  ;;  %v51_v26 = vld [vmem:[#allocation2 + $0xd0] sm:$0xff]  ;;  %v52_v27 = vld [vmem:[#allocation2 + $0xd8] sm:$0xff]  ;;  %v53_v28 = vld [vmem:[#allocation2 + $0xe0] sm:$0xff] }
  0x10   :  { %546 = vst [vmem:[#allocation5 + $0x48] sm:$0xff] %v34_v9  ;;  %v54_v29 = vld [vmem:[#allocation2 + $0xe8] sm:$0xff]  ;;  %v55_v30 = vld [vmem:[#allocation2 + $0xf0] sm:$0xff]  ;;  %v56_v31 = vld [vmem:[#allocation2 + $0xf8] sm:$0xff] }
  0x11   :  { %547 = vst [vmem:[#allocation5 + $0x50] sm:$0xff] %v35_v10  ;;  %v57_v32 = vld [vmem:[#allocation2 + $0x100] sm:$0xff]  ;;  %v58_v33 = vld [vmem:[#allocation2 + $0x108] sm:$0xff]  ;;  %v59_v34 = vld [vmem:[#allocation2 + $0x110] sm:$0xff] }
  0x12   :  { %548 = vst [vmem:[#allocation5 + $0x58] sm:$0xff] %v36_v11  ;;  %v60_v35 = vld [vmem:[#allocation2 + $0x118] sm:$0xff]  ;;  %v61_v36 = vld [vmem:[#allocation2 + $0x120] sm:$0xff]  ;;  %v62_v37 = vld [vmem:[#allocation2 + $0x128] sm:$0xff] }
  0x13   :  { %549 = vst [vmem:[#allocation5 + $0x60] sm:$0xff] %v37_v12  ;;  %v63_v38 = vld [vmem:[#allocation2 + $0x130] sm:$0xff]  ;;  %v64_v39 = vld [vmem:[#allocation2 + $0x138] sm:$0xff]  ;;  %v65_v40 = vld [vmem:[#allocation2 + $0x140] sm:$0xff] }
  0x14   :  { %550 = vst [vmem:[#allocation5 + $0x68] sm:$0xff] %v38_v13  ;;  %v66_v41 = vld [vmem:[#allocation2 + $0x148] sm:$0xff]  ;;  %v67_v42 = vld [vmem:[#allocation2 + $0x150] sm:$0xff]  ;;  %v68_v43 = vld [vmem:[#allocation2 + $0x158] sm:$0xff] }
  0x15   :  { %551 = vst [vmem:[#allocation5 + $0x70] sm:$0xff] %v39_v14  ;;  %v69_v44 = vld [vmem:[#allocation2 + $0x160] sm:$0xff]  ;;  %v70_v45 = vld [vmem:[#allocation2 + $0x168] sm:$0xff]  ;;  %v71_v46 = vld [vmem:[#allocation2 + $0x170] sm:$0xff] }
  0x16   :  { %552 = vst [vmem:[#allocation5 + $0x78] sm:$0xff] %v40_v15  ;;  %v72_v47 = vld [vmem:[#allocation2 + $0x178] sm:$0xff]  ;;  %v73_v48 = vld [vmem:[#allocation2 + $0x180] sm:$0xff]  ;;  %v74_v49 = vld [vmem:[#allocation2 + $0x188] sm:$0xff] }
  0x17   :  { %553 = vst [vmem:[#allocation5 + $0x80] sm:$0xff] %v41_v16  ;;  %v75_v50 = vld [vmem:[#allocation2 + $0x190] sm:$0xff]  ;;  %v76_v51 = vld [vmem:[#allocation2 + $0x198] sm:$0xff]  ;;  %v77_v52 = vld [vmem:[#allocation2 + $0x1a0] sm:$0xff] }
  0x18   :  { %554 = vst [vmem:[#allocation5 + $0x88] sm:$0xff] %v42_v17  ;;  %v78_v53 = vld [vmem:[#allocation2 + $0x1a8] sm:$0xff]  ;;  %v79_v54 = vld [vmem:[#allocation2 + $0x1b0] sm:$0xff]  ;;  %v80_v55 = vld [vmem:[#allocation2 + $0x1b8] sm:$0xff] }
  0x19   :  { %555 = vst [vmem:[#allocation5 + $0x90] sm:$0xff] %v43_v18  ;;  %v81_v56 = vld [vmem:[#allocation2 + $0x1c0] sm:$0xff]  ;;  %v82_v57 = vld [vmem:[#allocation2 + $0x1c8] sm:$0xff]  ;;  %v83_v58 = vld [vmem:[#allocation2 + $0x1d0] sm:$0xff] }
  0x1a   :  { %556 = vst [vmem:[#allocation5 + $0x98] sm:$0xff] %v44_v19  ;;  %v84_v59 = vld [vmem:[#allocation2 + $0x1d8] sm:$0xff]  ;;  %v85_v60 = vld [vmem:[#allocation2 + $0x1e0] sm:$0xff]  ;;  %v86_v61 = vld [vmem:[#allocation2 + $0x1e8] sm:$0xff] }
  0x1b   :  { %557 = vst [vmem:[#allocation5 + $0xa0] sm:$0xff] %v45_v20  ;;  %v87_v62 = vld [vmem:[#allocation2 + $0x1f0] sm:$0xff]  ;;  %v88_v63 = vld [vmem:[#allocation2 + $0x1f8] sm:$0xff]  ;;  %v89_v0 = vld [vmem:[#allocation2 + $0x200] sm:$0xff] }
  0x1c   :  { %558 = vst [vmem:[#allocation5 + $0xa8] sm:$0xff] %v46_v21  ;;  %v90_v1 = vld [vmem:[#allocation2 + $0x208] sm:$0xff]  ;;  %v91_v2 = vld [vmem:[#allocation2 + $0x210] sm:$0xff]  ;;  %v92_v3 = vld [vmem:[#allocation2 + $0x218] sm:$0xff] }
  0x1d   :  { %559 = vst [vmem:[#allocation5 + $0xb0] sm:$0xff] %v47_v22  ;;  %v93_v4 = vld [vmem:[#allocation2 + $0x220] sm:$0xff]  ;;  %v94_v5 = vld [vmem:[#allocation2 + $0x228] sm:$0xff]  ;;  %v95_v6 = vld [vmem:[#allocation2 + $0x230] sm:$0xff] }
  0x1e   :  { %560 = vst [vmem:[#allocation5 + $0xb8] sm:$0xff] %v48_v23  ;;  %v96_v7 = vld [vmem:[#allocation2 + $0x238] sm:$0xff]  ;;  %v97_v8 = vld [vmem:[#allocation2 + $0x240] sm:$0xff]  ;;  %v98_v9 = vld [vmem:[#allocation2 + $0x248] sm:$0xff] }
  0x1f   :  { %561 = vst [vmem:[#allocation5 + $0xc0] sm:$0xff] %v49_v24  ;;  %v99_v10 = vld [vmem:[#allocation2 + $0x250] sm:$0xff]  ;;  %v100_v11 = vld [vmem:[#allocation2 + $0x258] sm:$0xff]  ;;  %v101_v12 = vld [vmem:[#allocation2 + $0x260] sm:$0xff] }
  0x20   :  { %562 = vst [vmem:[#allocation5 + $0xc8] sm:$0xff] %v50_v25  ;;  %v102_v13 = vld [vmem:[#allocation2 + $0x268] sm:$0xff]  ;;  %v103_v14 = vld [vmem:[#allocation2 + $0x270] sm:$0xff]  ;;  %v104_v15 = vld [vmem:[#allocation2 + $0x278] sm:$0xff] }
  0x21   :  { %563 = vst [vmem:[#allocation5 + $0xd0] sm:$0xff] %v51_v26  ;;  %v105_v16 = vld [vmem:[#allocation2 + $0x280] sm:$0xff]  ;;  %v106_v17 = vld [vmem:[#allocation2 + $0x288] sm:$0xff]  ;;  %v107_v18 = vld [vmem:[#allocation2 + $0x290] sm:$0xff] }
  0x22   :  { %564 = vst [vmem:[#allocation5 + $0xd8] sm:$0xff] %v52_v27  ;;  %v108_v19 = vld [vmem:[#allocation2 + $0x298] sm:$0xff]  ;;  %v109_v20 = vld [vmem:[#allocation2 + $0x2a0] sm:$0xff]  ;;  %v110_v21 = vld [vmem:[#allocation2 + $0x2a8] sm:$0xff] }
  0x23   :  { %565 = vst [vmem:[#allocation5 + $0xe0] sm:$0xff] %v53_v28  ;;  %v111_v22 = vld [vmem:[#allocation2 + $0x2b0] sm:$0xff]  ;;  %v112_v23 = vld [vmem:[#allocation2 + $0x2b8] sm:$0xff]  ;;  %v113_v24 = vld [vmem:[#allocation2 + $0x2c0] sm:$0xff] }
  0x24   :  { %566 = vst [vmem:[#allocation5 + $0xe8] sm:$0xff] %v54_v29  ;;  %v114_v25 = vld [vmem:[#allocation2 + $0x2c8] sm:$0xff]  ;;  %v115_v26 = vld [vmem:[#allocation2 + $0x2d0] sm:$0xff]  ;;  %v116_v27 = vld [vmem:[#allocation2 + $0x2d8] sm:$0xff] }
  0x25   :  { %567 = vst [vmem:[#allocation5 + $0xf0] sm:$0xff] %v55_v30  ;;  %v117_v28 = vld [vmem:[#allocation2 + $0x2e0] sm:$0xff]  ;;  %v118_v29 = vld [vmem:[#allocation2 + $0x2e8] sm:$0xff]  ;;  %v119_v30 = vld [vmem:[#allocation2 + $0x2f0] sm:$0xff] }
  0x26   :  { %568 = vst [vmem:[#allocation5 + $0xf8] sm:$0xff] %v56_v31  ;;  %v120_v31 = vld [vmem:[#allocation2 + $0x2f8] sm:$0xff] }
  0x27   :  { %569 = vst [vmem:[#allocation5 + $0x100] sm:$0xff] %v57_v32  ;;  %v121_v32 = vld [vmem:[#allocation2 + $0x300] sm:$0xff] }
  0x28   :  { %570 = vst [vmem:[#allocation5 + $0x108] sm:$0xff] %v58_v33  ;;  %v122_v33 = vld [vmem:[#allocation2 + $0x308] sm:$0xff] }
  0x29   :  { %571 = vst [vmem:[#allocation5 + $0x110] sm:$0xff] %v59_v34  ;;  %v123_v34 = vld [vmem:[#allocation2 + $0x310] sm:$0xff] }
  0x2a   :  { %572 = vst [vmem:[#allocation5 + $0x118] sm:$0xff] %v60_v35  ;;  %v124_v35 = vld [vmem:[#allocation2 + $0x318] sm:$0xff] }
  0x2b   :  { %573 = vst [vmem:[#allocation5 + $0x120] sm:$0xff] %v61_v36  ;;  %v125_v36 = vld [vmem:[#allocation2 + $0x320] sm:$0xff] }
  0x2c   :  { %574 = vst [vmem:[#allocation5 + $0x128] sm:$0xff] %v62_v37  ;;  %v126_v37 = vld [vmem:[#allocation2 + $0x328] sm:$0xff] }
  0x2d   :  { %575 = vst [vmem:[#allocation5 + $0x130] sm:$0xff] %v63_v38  ;;  %v127_v38 = vld [vmem:[#allocation2 + $0x330] sm:$0xff] }
  0x2e   :  { %576 = vst [vmem:[#allocation5 + $0x138] sm:$0xff] %v64_v39  ;;  %v128_v39 = vld [vmem:[#allocation2 + $0x338] sm:$0xff] }
  0x2f   :  { %577 = vst [vmem:[#allocation5 + $0x140] sm:$0xff] %v65_v40  ;;  %v129_v40 = vld [vmem:[#allocation2 + $0x340] sm:$0xff] }
  0x30   :  { %578 = vst [vmem:[#allocation5 + $0x148] sm:$0xff] %v66_v41  ;;  %v130_v41 = vld [vmem:[#allocation2 + $0x348] sm:$0xff] }
  0x31   :  { %579 = vst [vmem:[#allocation5 + $0x150] sm:$0xff] %v67_v42  ;;  %v131_v42 = vld [vmem:[#allocation2 + $0x350] sm:$0xff] }
  0x32   :  { %580 = vst [vmem:[#allocation5 + $0x158] sm:$0xff] %v68_v43  ;;  %v132_v43 = vld [vmem:[#allocation2 + $0x358] sm:$0xff] }
  0x33   :  { %581 = vst [vmem:[#allocation5 + $0x160] sm:$0xff] %v69_v44  ;;  %v133_v44 = vld [vmem:[#allocation2 + $0x360] sm:$0xff] }
  0x34   :  { %582 = vst [vmem:[#allocation5 + $0x168] sm:$0xff] %v70_v45  ;;  %v134_v45 = vld [vmem:[#allocation2 + $0x368] sm:$0xff] }
  0x35   :  { %583 = vst [vmem:[#allocation5 + $0x170] sm:$0xff] %v71_v46  ;;  %v135_v46 = vld [vmem:[#allocation2 + $0x370] sm:$0xff] }
  0x36   :  { %584 = vst [vmem:[#allocation5 + $0x178] sm:$0xff] %v72_v47  ;;  %v136_v47 = vld [vmem:[#allocation2 + $0x378] sm:$0xff] }
  0x37   :  { %585 = vst [vmem:[#allocation5 + $0x180] sm:$0xff] %v73_v48  ;;  %v137_v48 = vld [vmem:[#allocation2 + $0x380] sm:$0xff] }
  0x38   :  { %586 = vst [vmem:[#allocation5 + $0x188] sm:$0xff] %v74_v49  ;;  %v138_v49 = vld [vmem:[#allocation2 + $0x388] sm:$0xff] }
  0x39   :  { %587 = vst [vmem:[#allocation5 + $0x190] sm:$0xff] %v75_v50  ;;  %v139_v50 = vld [vmem:[#allocation2 + $0x390] sm:$0xff] }
  0x3a   :  { %588 = vst [vmem:[#allocation5 + $0x198] sm:$0xff] %v76_v51  ;;  %v140_v51 = vld [vmem:[#allocation2 + $0x398] sm:$0xff] }
  0x3b   :  { %589 = vst [vmem:[#allocation5 + $0x1a0] sm:$0xff] %v77_v52  ;;  %v141_v52 = vld [vmem:[#allocation2 + $0x3a0] sm:$0xff] }
  0x3c   :  { %590 = vst [vmem:[#allocation5 + $0x1a8] sm:$0xff] %v78_v53  ;;  %v142_v53 = vld [vmem:[#allocation2 + $0x3a8] sm:$0xff] }
  0x3d   :  { %591 = vst [vmem:[#allocation5 + $0x1b0] sm:$0xff] %v79_v54  ;;  %v143_v54 = vld [vmem:[#allocation2 + $0x3b0] sm:$0xff] }
  0x3e   :  { %592 = vst [vmem:[#allocation5 + $0x1b8] sm:$0xff] %v80_v55  ;;  %v144_v55 = vld [vmem:[#allocation2 + $0x3b8] sm:$0xff] }
  0x3f   :  { %593 = vst [vmem:[#allocation5 + $0x1c0] sm:$0xff] %v81_v56  ;;  %v145_v56 = vld [vmem:[#allocation2 + $0x3c0] sm:$0xff] }
  0x40   :  { %594 = vst [vmem:[#allocation5 + $0x1c8] sm:$0xff] %v82_v57  ;;  %v146_v57 = vld [vmem:[#allocation2 + $0x3c8] sm:$0xff] }
  0x41   :  { %595 = vst [vmem:[#allocation5 + $0x1d0] sm:$0xff] %v83_v58  ;;  %v147_v58 = vld [vmem:[#allocation2 + $0x3d0] sm:$0xff] }
  0x42   :  { %596 = vst [vmem:[#allocation5 + $0x1d8] sm:$0xff] %v84_v59  ;;  %v148_v59 = vld [vmem:[#allocation2 + $0x3d8] sm:$0xff] }
  0x43   :  { %597 = vst [vmem:[#allocation5 + $0x1e0] sm:$0xff] %v85_v60  ;;  %v149_v60 = vld [vmem:[#allocation2 + $0x3e0] sm:$0xff] }
  0x44   :  { %598 = vst [vmem:[#allocation5 + $0x1e8] sm:$0xff] %v86_v61  ;;  %v150_v61 = vld [vmem:[#allocation2 + $0x3e8] sm:$0xff] }
  0x45   :  { %599 = vst [vmem:[#allocation5 + $0x1f0] sm:$0xff] %v87_v62  ;;  %v151_v62 = vld [vmem:[#allocation2 + $0x3f0] sm:$0xff] }
  0x46   :  { %600 = vst [vmem:[#allocation5 + $0x1f8] sm:$0xff] %v88_v63  ;;  %v152_v63 = vld [vmem:[#allocation2 + $0x3f8] sm:$0xff] }
  0x47   :  { %601 = vst [vmem:[#allocation5 + $0x200] sm:$0xff] %v89_v0  ;;  %v153_v0 = vld [vmem:[#allocation2 + $0x400] sm:$0xff] }
  0x48   :  { %602 = vst [vmem:[#allocation5 + $0x208] sm:$0xff] %v90_v1  ;;  %v154_v1 = vld [vmem:[#allocation2 + $0x408] sm:$0xff] }
  0x49   :  { %603 = vst [vmem:[#allocation5 + $0x210] sm:$0xff] %v91_v2  ;;  %v155_v2 = vld [vmem:[#allocation2 + $0x410] sm:$0xff] }
  0x4a   :  { %604 = vst [vmem:[#allocation5 + $0x218] sm:$0xff] %v92_v3  ;;  %v156_v3 = vld [vmem:[#allocation2 + $0x418] sm:$0xff] }
  0x4b   :  { %605 = vst [vmem:[#allocation5 + $0x220] sm:$0xff] %v93_v4  ;;  %v157_v4 = vld [vmem:[#allocation2 + $0x420] sm:$0xff] }
  0x4c   :  { %606 = vst [vmem:[#allocation5 + $0x228] sm:$0xff] %v94_v5  ;;  %v158_v5 = vld [vmem:[#allocation2 + $0x428] sm:$0xff] }
  0x4d   :  { %607 = vst [vmem:[#allocation5 + $0x230] sm:$0xff] %v95_v6  ;;  %v159_v6 = vld [vmem:[#allocation2 + $0x430] sm:$0xff] }
  0x4e   :  { %608 = vst [vmem:[#allocation5 + $0x238] sm:$0xff] %v96_v7  ;;  %v160_v7 = vld [vmem:[#allocation2 + $0x438] sm:$0xff] }
  0x4f   :  { %609 = vst [vmem:[#allocation5 + $0x240] sm:$0xff] %v97_v8  ;;  %v161_v8 = vld [vmem:[#allocation2 + $0x440] sm:$0xff] }
  0x50   :  { %610 = vst [vmem:[#allocation5 + $0x248] sm:$0xff] %v98_v9  ;;  %v162_v9 = vld [vmem:[#allocation2 + $0x448] sm:$0xff] }
  0x51   :  { %611 = vst [vmem:[#allocation5 + $0x250] sm:$0xff] %v99_v10  ;;  %v163_v10 = vld [vmem:[#allocation2 + $0x450] sm:$0xff] }
  0x52   :  { %612 = vst [vmem:[#allocation5 + $0x258] sm:$0xff] %v100_v11  ;;  %v164_v11 = vld [vmem:[#allocation2 + $0x458] sm:$0xff] }
  0x53   :  { %613 = vst [vmem:[#allocation5 + $0x260] sm:$0xff] %v101_v12  ;;  %v165_v12 = vld [vmem:[#allocation2 + $0x460] sm:$0xff] }
  0x54   :  { %614 = vst [vmem:[#allocation5 + $0x268] sm:$0xff] %v102_v13  ;;  %v166_v13 = vld [vmem:[#allocation2 + $0x468] sm:$0xff] }
  0x55   :  { %615 = vst [vmem:[#allocation5 + $0x270] sm:$0xff] %v103_v14  ;;  %v167_v14 = vld [vmem:[#allocation2 + $0x470] sm:$0xff] }
  0x56   :  { %616 = vst [vmem:[#allocation5 + $0x278] sm:$0xff] %v104_v15  ;;  %v168_v15 = vld [vmem:[#allocation2 + $0x478] sm:$0xff] }
  0x57   :  { %617 = vst [vmem:[#allocation5 + $0x280] sm:$0xff] %v105_v16  ;;  %v169_v16 = vld [vmem:[#allocation2 + $0x480] sm:$0xff] }
  0x58   :  { %618 = vst [vmem:[#allocation5 + $0x288] sm:$0xff] %v106_v17  ;;  %v170_v17 = vld [vmem:[#allocation2 + $0x488] sm:$0xff] }
  0x59   :  { %619 = vst [vmem:[#allocation5 + $0x290] sm:$0xff] %v107_v18  ;;  %v171_v18 = vld [vmem:[#allocation2 + $0x490] sm:$0xff] }
  0x5a   :  { %620 = vst [vmem:[#allocation5 + $0x298] sm:$0xff] %v108_v19  ;;  %v172_v19 = vld [vmem:[#allocation2 + $0x498] sm:$0xff] }
  0x5b   :  { %621 = vst [vmem:[#allocation5 + $0x2a0] sm:$0xff] %v109_v20  ;;  %v173_v20 = vld [vmem:[#allocation2 + $0x4a0] sm:$0xff] }
  0x5c   :  { %622 = vst [vmem:[#allocation5 + $0x2a8] sm:$0xff] %v110_v21  ;;  %v174_v21 = vld [vmem:[#allocation2 + $0x4a8] sm:$0xff] }
  0x5d   :  { %623 = vst [vmem:[#allocation5 + $0x2b0] sm:$0xff] %v111_v22  ;;  %v175_v22 = vld [vmem:[#allocation2 + $0x4b0] sm:$0xff] }
  0x5e   :  { %624 = vst [vmem:[#allocation5 + $0x2b8] sm:$0xff] %v112_v23  ;;  %v176_v23 = vld [vmem:[#allocation2 + $0x4b8] sm:$0xff] }
  0x5f   :  { %625 = vst [vmem:[#allocation5 + $0x2c0] sm:$0xff] %v113_v24  ;;  %v177_v24 = vld [vmem:[#allocation2 + $0x4c0] sm:$0xff] }
  0x60   :  { %626 = vst [vmem:[#allocation5 + $0x2c8] sm:$0xff] %v114_v25  ;;  %v178_v25 = vld [vmem:[#allocation2 + $0x4c8] sm:$0xff] }
  0x61   :  { %627 = vst [vmem:[#allocation5 + $0x2d0] sm:$0xff] %v115_v26  ;;  %v179_v26 = vld [vmem:[#allocation2 + $0x4d0] sm:$0xff] }
  0x62   :  { %628 = vst [vmem:[#allocation5 + $0x2d8] sm:$0xff] %v116_v27  ;;  %v180_v27 = vld [vmem:[#allocation2 + $0x4d8] sm:$0xff] }
  0x63   :  { %629 = vst [vmem:[#allocation5 + $0x2e0] sm:$0xff] %v117_v28  ;;  %v181_v28 = vld [vmem:[#allocation2 + $0x4e0] sm:$0xff] }
  0x64   :  { %630 = vst [vmem:[#allocation5 + $0x2e8] sm:$0xff] %v118_v29  ;;  %v182_v29 = vld [vmem:[#allocation2 + $0x4e8] sm:$0xff] }
  0x65   :  { %631 = vst [vmem:[#allocation5 + $0x2f0] sm:$0xff] %v119_v30  ;;  %v183_v30 = vld [vmem:[#allocation2 + $0x4f0] sm:$0xff] }
  0x66   :  { %632 = vst [vmem:[#allocation5 + $0x2f8] sm:$0xff] %v120_v31  ;;  %v184_v31 = vld [vmem:[#allocation2 + $0x4f8] sm:$0xff] }
  0x67   :  { %633 = vst [vmem:[#allocation5 + $0x300] sm:$0xff] %v121_v32  ;;  %v185_v32 = vld [vmem:[#allocation2 + $0x500] sm:$0xff] }
  0x68   :  { %634 = vst [vmem:[#allocation5 + $0x308] sm:$0xff] %v122_v33  ;;  %v186_v33 = vld [vmem:[#allocation2 + $0x508] sm:$0xff] }
  0x69   :  { %635 = vst [vmem:[#allocation5 + $0x310] sm:$0xff] %v123_v34  ;;  %v187_v34 = vld [vmem:[#allocation2 + $0x510] sm:$0xff] }
  0x6a   :  { %636 = vst [vmem:[#allocation5 + $0x318] sm:$0xff] %v124_v35  ;;  %v188_v35 = vld [vmem:[#allocation2 + $0x518] sm:$0xff] }
  0x6b   :  { %637 = vst [vmem:[#allocation5 + $0x320] sm:$0xff] %v125_v36  ;;  %v189_v36 = vld [vmem:[#allocation2 + $0x520] sm:$0xff] }
  0x6c   :  { %638 = vst [vmem:[#allocation5 + $0x328] sm:$0xff] %v126_v37  ;;  %v190_v37 = vld [vmem:[#allocation2 + $0x528] sm:$0xff] }
  0x6d   :  { %639 = vst [vmem:[#allocation5 + $0x330] sm:$0xff] %v127_v38  ;;  %v191_v38 = vld [vmem:[#allocation2 + $0x530] sm:$0xff] }
  0x6e   :  { %640 = vst [vmem:[#allocation5 + $0x338] sm:$0xff] %v128_v39  ;;  %v192_v39 = vld [vmem:[#allocation2 + $0x538] sm:$0xff] }
  0x6f   :  { %641 = vst [vmem:[#allocation5 + $0x340] sm:$0xff] %v129_v40  ;;  %v193_v40 = vld [vmem:[#allocation2 + $0x540] sm:$0xff] }
  0x70   :  { %642 = vst [vmem:[#allocation5 + $0x348] sm:$0xff] %v130_v41  ;;  %v194_v41 = vld [vmem:[#allocation2 + $0x548] sm:$0xff] }
  0x71   :  { %643 = vst [vmem:[#allocation5 + $0x350] sm:$0xff] %v131_v42  ;;  %v195_v42 = vld [vmem:[#allocation2 + $0x550] sm:$0xff] }
  0x72   :  { %644 = vst [vmem:[#allocation5 + $0x358] sm:$0xff] %v132_v43  ;;  %v196_v43 = vld [vmem:[#allocation2 + $0x558] sm:$0xff] }
  0x73   :  { %645 = vst [vmem:[#allocation5 + $0x360] sm:$0xff] %v133_v44  ;;  %v197_v44 = vld [vmem:[#allocation2 + $0x560] sm:$0xff] }
  0x74   :  { %646 = vst [vmem:[#allocation5 + $0x368] sm:$0xff] %v134_v45  ;;  %v198_v45 = vld [vmem:[#allocation2 + $0x568] sm:$0xff] }
  0x75   :  { %647 = vst [vmem:[#allocation5 + $0x370] sm:$0xff] %v135_v46  ;;  %v199_v46 = vld [vmem:[#allocation2 + $0x570] sm:$0xff] }
  0x76   :  { %648 = vst [vmem:[#allocation5 + $0x378] sm:$0xff] %v136_v47  ;;  %v200_v47 = vld [vmem:[#allocation2 + $0x578] sm:$0xff] }
  0x77   :  { %649 = vst [vmem:[#allocation5 + $0x380] sm:$0xff] %v137_v48  ;;  %v201_v48 = vld [vmem:[#allocation2 + $0x580] sm:$0xff] }
  0x78   :  { %650 = vst [vmem:[#allocation5 + $0x388] sm:$0xff] %v138_v49  ;;  %v202_v49 = vld [vmem:[#allocation2 + $0x588] sm:$0xff] }
  0x79   :  { %651 = vst [vmem:[#allocation5 + $0x390] sm:$0xff] %v139_v50  ;;  %v203_v50 = vld [vmem:[#allocation2 + $0x590] sm:$0xff] }
  0x7a   :  { %652 = vst [vmem:[#allocation5 + $0x398] sm:$0xff] %v140_v51  ;;  %v204_v51 = vld [vmem:[#allocation2 + $0x598] sm:$0xff] }
  0x7b   :  { %653 = vst [vmem:[#allocation5 + $0x3a0] sm:$0xff] %v141_v52  ;;  %v205_v52 = vld [vmem:[#allocation2 + $0x5a0] sm:$0xff] }
  0x7c   :  { %654 = vst [vmem:[#allocation5 + $0x3a8] sm:$0xff] %v142_v53  ;;  %v206_v53 = vld [vmem:[#allocation2 + $0x5a8] sm:$0xff] }
  0x7d   :  { %655 = vst [vmem:[#allocation5 + $0x3b0] sm:$0xff] %v143_v54  ;;  %v207_v54 = vld [vmem:[#allocation2 + $0x5b0] sm:$0xff] }
  0x7e   :  { %656 = vst [vmem:[#allocation5 + $0x3b8] sm:$0xff] %v144_v55  ;;  %v208_v55 = vld [vmem:[#allocation2 + $0x5b8] sm:$0xff] }
  0x7f   :  { %657 = vst [vmem:[#allocation5 + $0x3c0] sm:$0xff] %v145_v56  ;;  %v209_v56 = vld [vmem:[#allocation2 + $0x5c0] sm:$0xff] }
  0x80   :  { %658 = vst [vmem:[#allocation5 + $0x3c8] sm:$0xff] %v146_v57  ;;  %v210_v57 = vld [vmem:[#allocation2 + $0x5c8] sm:$0xff] }
  0x81   :  { %659 = vst [vmem:[#allocation5 + $0x3d0] sm:$0xff] %v147_v58  ;;  %v211_v58 = vld [vmem:[#allocation2 + $0x5d0] sm:$0xff] }
  0x82   :  { %660 = vst [vmem:[#allocation5 + $0x3d8] sm:$0xff] %v148_v59  ;;  %v212_v59 = vld [vmem:[#allocation2 + $0x5d8] sm:$0xff] }
  0x83   :  { %661 = vst [vmem:[#allocation5 + $0x3e0] sm:$0xff] %v149_v60  ;;  %v213_v60 = vld [vmem:[#allocation2 + $0x5e0] sm:$0xff] }
  0x84   :  { %662 = vst [vmem:[#allocation5 + $0x3e8] sm:$0xff] %v150_v61  ;;  %v214_v61 = vld [vmem:[#allocation2 + $0x5e8] sm:$0xff] }
  0x85   :  { %663 = vst [vmem:[#allocation5 + $0x3f0] sm:$0xff] %v151_v62  ;;  %v215_v62 = vld [vmem:[#allocation2 + $0x5f0] sm:$0xff] }
  0x86   :  { %664 = vst [vmem:[#allocation5 + $0x3f8] sm:$0xff] %v152_v63  ;;  %v216_v63 = vld [vmem:[#allocation2 + $0x5f8] sm:$0xff] }
  0x87   :  { %665 = vst [vmem:[#allocation5 + $0x400] sm:$0xff] %v153_v0  ;;  %v217_v0 = vld [vmem:[#allocation2 + $0x600] sm:$0xff] }
  0x88   :  { %666 = vst [vmem:[#allocation5 + $0x408] sm:$0xff] %v154_v1  ;;  %v218_v1 = vld [vmem:[#allocation2 + $0x608] sm:$0xff] }
  0x89   :  { %667 = vst [vmem:[#allocation5 + $0x410] sm:$0xff] %v155_v2  ;;  %v219_v2 = vld [vmem:[#allocation2 + $0x610] sm:$0xff] }
  0x8a   :  { %668 = vst [vmem:[#allocation5 + $0x418] sm:$0xff] %v156_v3  ;;  %v220_v3 = vld [vmem:[#allocation2 + $0x618] sm:$0xff] }
  0x8b   :  { %669 = vst [vmem:[#allocation5 + $0x420] sm:$0xff] %v157_v4  ;;  %v221_v4 = vld [vmem:[#allocation2 + $0x620] sm:$0xff] }
  0x8c   :  { %670 = vst [vmem:[#allocation5 + $0x428] sm:$0xff] %v158_v5  ;;  %v222_v5 = vld [vmem:[#allocation2 + $0x628] sm:$0xff] }
  0x8d   :  { %671 = vst [vmem:[#allocation5 + $0x430] sm:$0xff] %v159_v6  ;;  %v223_v6 = vld [vmem:[#allocation2 + $0x630] sm:$0xff] }
  0x8e   :  { %672 = vst [vmem:[#allocation5 + $0x438] sm:$0xff] %v160_v7  ;;  %v224_v7 = vld [vmem:[#allocation2 + $0x638] sm:$0xff] }
  0x8f   :  { %673 = vst [vmem:[#allocation5 + $0x440] sm:$0xff] %v161_v8  ;;  %v225_v8 = vld [vmem:[#allocation2 + $0x640] sm:$0xff] }
  0x90   :  { %674 = vst [vmem:[#allocation5 + $0x448] sm:$0xff] %v162_v9  ;;  %v226_v9 = vld [vmem:[#allocation2 + $0x648] sm:$0xff] }
  0x91   :  { %675 = vst [vmem:[#allocation5 + $0x450] sm:$0xff] %v163_v10  ;;  %v227_v10 = vld [vmem:[#allocation2 + $0x650] sm:$0xff] }
  0x92   :  { %676 = vst [vmem:[#allocation5 + $0x458] sm:$0xff] %v164_v11  ;;  %v228_v11 = vld [vmem:[#allocation2 + $0x658] sm:$0xff] }
  0x93   :  { %677 = vst [vmem:[#allocation5 + $0x460] sm:$0xff] %v165_v12  ;;  %v229_v12 = vld [vmem:[#allocation2 + $0x660] sm:$0xff] }
  0x94   :  { %678 = vst [vmem:[#allocation5 + $0x468] sm:$0xff] %v166_v13  ;;  %v230_v13 = vld [vmem:[#allocation2 + $0x668] sm:$0xff] }
  0x95   :  { %679 = vst [vmem:[#allocation5 + $0x470] sm:$0xff] %v167_v14  ;;  %v231_v14 = vld [vmem:[#allocation2 + $0x670] sm:$0xff] }
  0x96   :  { %680 = vst [vmem:[#allocation5 + $0x478] sm:$0xff] %v168_v15  ;;  %v232_v15 = vld [vmem:[#allocation2 + $0x678] sm:$0xff] }
  0x97   :  { %681 = vst [vmem:[#allocation5 + $0x480] sm:$0xff] %v169_v16  ;;  %v233_v16 = vld [vmem:[#allocation2 + $0x680] sm:$0xff] }
  0x98   :  { %682 = vst [vmem:[#allocation5 + $0x488] sm:$0xff] %v170_v17  ;;  %v234_v17 = vld [vmem:[#allocation2 + $0x688] sm:$0xff] }
  0x99   :  { %683 = vst [vmem:[#allocation5 + $0x490] sm:$0xff] %v171_v18  ;;  %v235_v18 = vld [vmem:[#allocation2 + $0x690] sm:$0xff] }
  0x9a   :  { %684 = vst [vmem:[#allocation5 + $0x498] sm:$0xff] %v172_v19  ;;  %v236_v19 = vld [vmem:[#allocation2 + $0x698] sm:$0xff] }
  0x9b   :  { %685 = vst [vmem:[#allocation5 + $0x4a0] sm:$0xff] %v173_v20  ;;  %v237_v20 = vld [vmem:[#allocation2 + $0x6a0] sm:$0xff] }
  0x9c   :  { %686 = vst [vmem:[#allocation5 + $0x4a8] sm:$0xff] %v174_v21  ;;  %v238_v21 = vld [vmem:[#allocation2 + $0x6a8] sm:$0xff] }
  0x9d   :  { %687 = vst [vmem:[#allocation5 + $0x4b0] sm:$0xff] %v175_v22  ;;  %v239_v22 = vld [vmem:[#allocation2 + $0x6b0] sm:$0xff] }
  0x9e   :  { %688 = vst [vmem:[#allocation5 + $0x4b8] sm:$0xff] %v176_v23  ;;  %v240_v23 = vld [vmem:[#allocation2 + $0x6b8] sm:$0xff] }
  0x9f   :  { %689 = vst [vmem:[#allocation5 + $0x4c0] sm:$0xff] %v177_v24  ;;  %v241_v24 = vld [vmem:[#allocation2 + $0x6c0] sm:$0xff] }
  0xa0   :  { %690 = vst [vmem:[#allocation5 + $0x4c8] sm:$0xff] %v178_v25  ;;  %v242_v25 = vld [vmem:[#allocation2 + $0x6c8] sm:$0xff] }
  0xa1   :  { %691 = vst [vmem:[#allocation5 + $0x4d0] sm:$0xff] %v179_v26  ;;  %v243_v26 = vld [vmem:[#allocation2 + $0x6d0] sm:$0xff] }
  0xa2   :  { %692 = vst [vmem:[#allocation5 + $0x4d8] sm:$0xff] %v180_v27  ;;  %v244_v27 = vld [vmem:[#allocation2 + $0x6d8] sm:$0xff] }
  0xa3   :  { %693 = vst [vmem:[#allocation5 + $0x4e0] sm:$0xff] %v181_v28  ;;  %v245_v28 = vld [vmem:[#allocation2 + $0x6e0] sm:$0xff] }
  0xa4   :  { %694 = vst [vmem:[#allocation5 + $0x4e8] sm:$0xff] %v182_v29  ;;  %v246_v29 = vld [vmem:[#allocation2 + $0x6e8] sm:$0xff] }
  0xa5   :  { %695 = vst [vmem:[#allocation5 + $0x4f0] sm:$0xff] %v183_v30  ;;  %v247_v30 = vld [vmem:[#allocation2 + $0x6f0] sm:$0xff] }
  0xa6   :  { %696 = vst [vmem:[#allocation5 + $0x4f8] sm:$0xff] %v184_v31  ;;  %v248_v31 = vld [vmem:[#allocation2 + $0x6f8] sm:$0xff] }
  0xa7   :  { %697 = vst [vmem:[#allocation5 + $0x500] sm:$0xff] %v185_v32  ;;  %v249_v32 = vld [vmem:[#allocation2 + $0x700] sm:$0xff] }
  0xa8   :  { %698 = vst [vmem:[#allocation5 + $0x508] sm:$0xff] %v186_v33  ;;  %v250_v33 = vld [vmem:[#allocation2 + $0x708] sm:$0xff] }
  0xa9   :  { %699 = vst [vmem:[#allocation5 + $0x510] sm:$0xff] %v187_v34  ;;  %v251_v34 = vld [vmem:[#allocation2 + $0x710] sm:$0xff] }
  0xaa   :  { %700 = vst [vmem:[#allocation5 + $0x518] sm:$0xff] %v188_v35  ;;  %v252_v35 = vld [vmem:[#allocation2 + $0x718] sm:$0xff] }
  0xab   :  { %701 = vst [vmem:[#allocation5 + $0x520] sm:$0xff] %v189_v36  ;;  %v253_v36 = vld [vmem:[#allocation2 + $0x720] sm:$0xff] }
  0xac   :  { %702 = vst [vmem:[#allocation5 + $0x528] sm:$0xff] %v190_v37  ;;  %v254_v37 = vld [vmem:[#allocation2 + $0x728] sm:$0xff] }
  0xad   :  { %703 = vst [vmem:[#allocation5 + $0x530] sm:$0xff] %v191_v38  ;;  %v255_v38 = vld [vmem:[#allocation2 + $0x730] sm:$0xff] }
  0xae   :  { %704 = vst [vmem:[#allocation5 + $0x538] sm:$0xff] %v192_v39  ;;  %v256_v39 = vld [vmem:[#allocation2 + $0x738] sm:$0xff] }
  0xaf   :  { %705 = vst [vmem:[#allocation5 + $0x540] sm:$0xff] %v193_v40  ;;  %v257_v40 = vld [vmem:[#allocation2 + $0x740] sm:$0xff] }
  0xb0   :  { %706 = vst [vmem:[#allocation5 + $0x548] sm:$0xff] %v194_v41  ;;  %v258_v41 = vld [vmem:[#allocation2 + $0x748] sm:$0xff] }
  0xb1   :  { %707 = vst [vmem:[#allocation5 + $0x550] sm:$0xff] %v195_v42  ;;  %v259_v42 = vld [vmem:[#allocation2 + $0x750] sm:$0xff] }
  0xb2   :  { %708 = vst [vmem:[#allocation5 + $0x558] sm:$0xff] %v196_v43  ;;  %v260_v43 = vld [vmem:[#allocation2 + $0x758] sm:$0xff] }
  0xb3   :  { %709 = vst [vmem:[#allocation5 + $0x560] sm:$0xff] %v197_v44  ;;  %v261_v44 = vld [vmem:[#allocation2 + $0x760] sm:$0xff] }
  0xb4   :  { %710 = vst [vmem:[#allocation5 + $0x568] sm:$0xff] %v198_v45  ;;  %v262_v45 = vld [vmem:[#allocation2 + $0x768] sm:$0xff] }
  0xb5   :  { %711 = vst [vmem:[#allocation5 + $0x570] sm:$0xff] %v199_v46  ;;  %v263_v46 = vld [vmem:[#allocation2 + $0x770] sm:$0xff] }
  0xb6   :  { %712 = vst [vmem:[#allocation5 + $0x578] sm:$0xff] %v200_v47  ;;  %v264_v47 = vld [vmem:[#allocation2 + $0x778] sm:$0xff] }
  0xb7   :  { %713 = vst [vmem:[#allocation5 + $0x580] sm:$0xff] %v201_v48  ;;  %v265_v48 = vld [vmem:[#allocation2 + $0x780] sm:$0xff] }
  0xb8   :  { %714 = vst [vmem:[#allocation5 + $0x588] sm:$0xff] %v202_v49  ;;  %v266_v49 = vld [vmem:[#allocation2 + $0x788] sm:$0xff] }
  0xb9   :  { %715 = vst [vmem:[#allocation5 + $0x590] sm:$0xff] %v203_v50  ;;  %v267_v50 = vld [vmem:[#allocation2 + $0x790] sm:$0xff] }
  0xba   :  { %716 = vst [vmem:[#allocation5 + $0x598] sm:$0xff] %v204_v51  ;;  %v268_v51 = vld [vmem:[#allocation2 + $0x798] sm:$0xff] }
  0xbb   :  { %717 = vst [vmem:[#allocation5 + $0x5a0] sm:$0xff] %v205_v52  ;;  %v269_v52 = vld [vmem:[#allocation2 + $0x7a0] sm:$0xff] }
  0xbc   :  { %718 = vst [vmem:[#allocation5 + $0x5a8] sm:$0xff] %v206_v53  ;;  %v270_v53 = vld [vmem:[#allocation2 + $0x7a8] sm:$0xff] }
  0xbd   :  { %719 = vst [vmem:[#allocation5 + $0x5b0] sm:$0xff] %v207_v54  ;;  %v271_v54 = vld [vmem:[#allocation2 + $0x7b0] sm:$0xff] }
  0xbe   :  { %720 = vst [vmem:[#allocation5 + $0x5b8] sm:$0xff] %v208_v55  ;;  %v272_v55 = vld [vmem:[#allocation2 + $0x7b8] sm:$0xff] }
  0xbf   :  { %721 = vst [vmem:[#allocation5 + $0x5c0] sm:$0xff] %v209_v56  ;;  %v273_v56 = vld [vmem:[#allocation2 + $0x7c0] sm:$0xff] }
  0xc0   :  { %722 = vst [vmem:[#allocation5 + $0x5c8] sm:$0xff] %v210_v57  ;;  %v274_v57 = vld [vmem:[#allocation2 + $0x7c8] sm:$0xff] }
  0xc1   :  { %723 = vst [vmem:[#allocation5 + $0x5d0] sm:$0xff] %v211_v58  ;;  %v275_v58 = vld [vmem:[#allocation2 + $0x7d0] sm:$0xff] }
  0xc2   :  { %724 = vst [vmem:[#allocation5 + $0x5d8] sm:$0xff] %v212_v59  ;;  %v276_v59 = vld [vmem:[#allocation2 + $0x7d8] sm:$0xff] }
  0xc3   :  { %725 = vst [vmem:[#allocation5 + $0x5e0] sm:$0xff] %v213_v60  ;;  %v277_v60 = vld [vmem:[#allocation2 + $0x7e0] sm:$0xff] }
  0xc4   :  { %726 = vst [vmem:[#allocation5 + $0x5e8] sm:$0xff] %v214_v61  ;;  %v278_v61 = vld [vmem:[#allocation2 + $0x7e8] sm:$0xff] }
  0xc5   :  { %727 = vst [vmem:[#allocation5 + $0x5f0] sm:$0xff] %v215_v62  ;;  %v279_v62 = vld [vmem:[#allocation2 + $0x7f0] sm:$0xff] }
  0xc6   :  { %728 = vst [vmem:[#allocation5 + $0x5f8] sm:$0xff] %v216_v63  ;;  %v280_v63 = vld [vmem:[#allocation2 + $0x7f8] sm:$0xff] }
  0xc7   :  { %729 = vst [vmem:[#allocation5 + $0x600] sm:$0xff] %v217_v0  ;;  %v281_v0 = vld [vmem:[#allocation2 + $0x800] sm:$0xff] }
  0xc8   :  { %730 = vst [vmem:[#allocation5 + $0x608] sm:$0xff] %v218_v1  ;;  %v282_v1 = vld [vmem:[#allocation2 + $0x808] sm:$0xff] }
  0xc9   :  { %731 = vst [vmem:[#allocation5 + $0x610] sm:$0xff] %v219_v2  ;;  %v283_v2 = vld [vmem:[#allocation2 + $0x810] sm:$0xff] }
  0xca   :  { %732 = vst [vmem:[#allocation5 + $0x618] sm:$0xff] %v220_v3  ;;  %v284_v3 = vld [vmem:[#allocation2 + $0x818] sm:$0xff] }
  0xcb   :  { %733 = vst [vmem:[#allocation5 + $0x620] sm:$0xff] %v221_v4  ;;  %v285_v4 = vld [vmem:[#allocation2 + $0x820] sm:$0xff] }
  0xcc   :  { %734 = vst [vmem:[#allocation5 + $0x628] sm:$0xff] %v222_v5  ;;  %v286_v5 = vld [vmem:[#allocation2 + $0x828] sm:$0xff] }
  0xcd   :  { %735 = vst [vmem:[#allocation5 + $0x630] sm:$0xff] %v223_v6  ;;  %v287_v6 = vld [vmem:[#allocation2 + $0x830] sm:$0xff] }
  0xce   :  { %736 = vst [vmem:[#allocation5 + $0x638] sm:$0xff] %v224_v7  ;;  %v288_v7 = vld [vmem:[#allocation2 + $0x838] sm:$0xff] }
  0xcf   :  { %737 = vst [vmem:[#allocation5 + $0x640] sm:$0xff] %v225_v8  ;;  %v289_v8 = vld [vmem:[#allocation2 + $0x840] sm:$0xff] }
  0xd0   :  { %738 = vst [vmem:[#allocation5 + $0x648] sm:$0xff] %v226_v9  ;;  %v290_v9 = vld [vmem:[#allocation2 + $0x848] sm:$0xff] }
  0xd1   :  { %739 = vst [vmem:[#allocation5 + $0x650] sm:$0xff] %v227_v10  ;;  %v291_v10 = vld [vmem:[#allocation2 + $0x850] sm:$0xff] }
  0xd2   :  { %740 = vst [vmem:[#allocation5 + $0x658] sm:$0xff] %v228_v11  ;;  %v292_v11 = vld [vmem:[#allocation2 + $0x858] sm:$0xff] }
  0xd3   :  { %741 = vst [vmem:[#allocation5 + $0x660] sm:$0xff] %v229_v12  ;;  %v293_v12 = vld [vmem:[#allocation2 + $0x860] sm:$0xff] }
  0xd4   :  { %742 = vst [vmem:[#allocation5 + $0x668] sm:$0xff] %v230_v13  ;;  %v294_v13 = vld [vmem:[#allocation2 + $0x868] sm:$0xff] }
  0xd5   :  { %743 = vst [vmem:[#allocation5 + $0x670] sm:$0xff] %v231_v14  ;;  %v295_v14 = vld [vmem:[#allocation2 + $0x870] sm:$0xff] }
  0xd6   :  { %744 = vst [vmem:[#allocation5 + $0x678] sm:$0xff] %v232_v15  ;;  %v296_v15 = vld [vmem:[#allocation2 + $0x878] sm:$0xff] }
  0xd7   :  { %745 = vst [vmem:[#allocation5 + $0x680] sm:$0xff] %v233_v16  ;;  %v297_v16 = vld [vmem:[#allocation2 + $0x880] sm:$0xff] }
  0xd8   :  { %746 = vst [vmem:[#allocation5 + $0x688] sm:$0xff] %v234_v17  ;;  %v298_v17 = vld [vmem:[#allocation2 + $0x888] sm:$0xff] }
  0xd9   :  { %747 = vst [vmem:[#allocation5 + $0x690] sm:$0xff] %v235_v18  ;;  %v299_v18 = vld [vmem:[#allocation2 + $0x890] sm:$0xff] }
  0xda   :  { %748 = vst [vmem:[#allocation5 + $0x698] sm:$0xff] %v236_v19  ;;  %v300_v19 = vld [vmem:[#allocation2 + $0x898] sm:$0xff] }
  0xdb   :  { %749 = vst [vmem:[#allocation5 + $0x6a0] sm:$0xff] %v237_v20  ;;  %v301_v20 = vld [vmem:[#allocation2 + $0x8a0] sm:$0xff] }
  0xdc   :  { %750 = vst [vmem:[#allocation5 + $0x6a8] sm:$0xff] %v238_v21  ;;  %v302_v21 = vld [vmem:[#allocation2 + $0x8a8] sm:$0xff] }
  0xdd   :  { %751 = vst [vmem:[#allocation5 + $0x6b0] sm:$0xff] %v239_v22  ;;  %v303_v22 = vld [vmem:[#allocation2 + $0x8b0] sm:$0xff] }
  0xde   :  { %752 = vst [vmem:[#allocation5 + $0x6b8] sm:$0xff] %v240_v23  ;;  %v304_v23 = vld [vmem:[#allocation2 + $0x8b8] sm:$0xff] }
  0xdf   :  { %753 = vst [vmem:[#allocation5 + $0x6c0] sm:$0xff] %v241_v24  ;;  %v305_v24 = vld [vmem:[#allocation2 + $0x8c0] sm:$0xff] }
  0xe0   :  { %754 = vst [vmem:[#allocation5 + $0x6c8] sm:$0xff] %v242_v25  ;;  %v306_v25 = vld [vmem:[#allocation2 + $0x8c8] sm:$0xff] }
  0xe1   :  { %755 = vst [vmem:[#allocation5 + $0x6d0] sm:$0xff] %v243_v26  ;;  %v307_v26 = vld [vmem:[#allocation2 + $0x8d0] sm:$0xff] }
  0xe2   :  { %756 = vst [vmem:[#allocation5 + $0x6d8] sm:$0xff] %v244_v27  ;;  %v308_v27 = vld [vmem:[#allocation2 + $0x8d8] sm:$0xff] }
  0xe3   :  { %757 = vst [vmem:[#allocation5 + $0x6e0] sm:$0xff] %v245_v28  ;;  %v309_v28 = vld [vmem:[#allocation2 + $0x8e0] sm:$0xff] }
  0xe4   :  { %758 = vst [vmem:[#allocation5 + $0x6e8] sm:$0xff] %v246_v29  ;;  %v310_v29 = vld [vmem:[#allocation2 + $0x8e8] sm:$0xff] }
  0xe5   :  { %759 = vst [vmem:[#allocation5 + $0x6f0] sm:$0xff] %v247_v30  ;;  %v311_v30 = vld [vmem:[#allocation2 + $0x8f0] sm:$0xff] }
  0xe6   :  { %760 = vst [vmem:[#allocation5 + $0x6f8] sm:$0xff] %v248_v31  ;;  %v312_v31 = vld [vmem:[#allocation2 + $0x8f8] sm:$0xff] }
  0xe7   :  { %761 = vst [vmem:[#allocation5 + $0x700] sm:$0xff] %v249_v32  ;;  %v313_v32 = vld [vmem:[#allocation2 + $0x900] sm:$0xff] }
  0xe8   :  { %762 = vst [vmem:[#allocation5 + $0x708] sm:$0xff] %v250_v33  ;;  %v314_v33 = vld [vmem:[#allocation2 + $0x908] sm:$0xff] }
  0xe9   :  { %763 = vst [vmem:[#allocation5 + $0x710] sm:$0xff] %v251_v34  ;;  %v315_v34 = vld [vmem:[#allocation2 + $0x910] sm:$0xff] }
  0xea   :  { %764 = vst [vmem:[#allocation5 + $0x718] sm:$0xff] %v252_v35  ;;  %v316_v35 = vld [vmem:[#allocation2 + $0x918] sm:$0xff] }
  0xeb   :  { %765 = vst [vmem:[#allocation5 + $0x720] sm:$0xff] %v253_v36  ;;  %v317_v36 = vld [vmem:[#allocation2 + $0x920] sm:$0xff] }
  0xec   :  { %766 = vst [vmem:[#allocation5 + $0x728] sm:$0xff] %v254_v37  ;;  %v318_v37 = vld [vmem:[#allocation2 + $0x928] sm:$0xff] }
  0xed   :  { %767 = vst [vmem:[#allocation5 + $0x730] sm:$0xff] %v255_v38  ;;  %v319_v38 = vld [vmem:[#allocation2 + $0x930] sm:$0xff] }
  0xee   :  { %768 = vst [vmem:[#allocation5 + $0x738] sm:$0xff] %v256_v39  ;;  %v320_v39 = vld [vmem:[#allocation2 + $0x938] sm:$0xff] }
  0xef   :  { %769 = vst [vmem:[#allocation5 + $0x740] sm:$0xff] %v257_v40  ;;  %v321_v40 = vld [vmem:[#allocation2 + $0x940] sm:$0xff] }
  0xf0   :  { %770 = vst [vmem:[#allocation5 + $0x748] sm:$0xff] %v258_v41  ;;  %v322_v41 = vld [vmem:[#allocation2 + $0x948] sm:$0xff] }
  0xf1   :  { %771 = vst [vmem:[#allocation5 + $0x750] sm:$0xff] %v259_v42  ;;  %v323_v42 = vld [vmem:[#allocation2 + $0x950] sm:$0xff] }
  0xf2   :  { %772 = vst [vmem:[#allocation5 + $0x758] sm:$0xff] %v260_v43  ;;  %v324_v43 = vld [vmem:[#allocation2 + $0x958] sm:$0xff] }
  0xf3   :  { %773 = vst [vmem:[#allocation5 + $0x760] sm:$0xff] %v261_v44  ;;  %v325_v44 = vld [vmem:[#allocation2 + $0x960] sm:$0xff] }
  0xf4   :  { %774 = vst [vmem:[#allocation5 + $0x768] sm:$0xff] %v262_v45  ;;  %v326_v45 = vld [vmem:[#allocation2 + $0x968] sm:$0xff] }
  0xf5   :  { %775 = vst [vmem:[#allocation5 + $0x770] sm:$0xff] %v263_v46  ;;  %v327_v46 = vld [vmem:[#allocation2 + $0x970] sm:$0xff] }
  0xf6   :  { %776 = vst [vmem:[#allocation5 + $0x778] sm:$0xff] %v264_v47  ;;  %v328_v47 = vld [vmem:[#allocation2 + $0x978] sm:$0xff] }
  0xf7   :  { %777 = vst [vmem:[#allocation5 + $0x780] sm:$0xff] %v265_v48  ;;  %v329_v48 = vld [vmem:[#allocation2 + $0x980] sm:$0xff] }
  0xf8   :  { %778 = vst [vmem:[#allocation5 + $0x788] sm:$0xff] %v266_v49  ;;  %v330_v49 = vld [vmem:[#allocation2 + $0x988] sm:$0xff] }
  0xf9   :  { %779 = vst [vmem:[#allocation5 + $0x790] sm:$0xff] %v267_v50  ;;  %v331_v50 = vld [vmem:[#allocation2 + $0x990] sm:$0xff] }
  0xfa   :  { %780 = vst [vmem:[#allocation5 + $0x798] sm:$0xff] %v268_v51  ;;  %v332_v51 = vld [vmem:[#allocation2 + $0x998] sm:$0xff] }
  0xfb   :  { %781 = vst [vmem:[#allocation5 + $0x7a0] sm:$0xff] %v269_v52  ;;  %v333_v52 = vld [vmem:[#allocation2 + $0x9a0] sm:$0xff] }
  0xfc   :  { %782 = vst [vmem:[#allocation5 + $0x7a8] sm:$0xff] %v270_v53  ;;  %v334_v53 = vld [vmem:[#allocation2 + $0x9a8] sm:$0xff] }
  0xfd   :  { %783 = vst [vmem:[#allocation5 + $0x7b0] sm:$0xff] %v271_v54  ;;  %v335_v54 = vld [vmem:[#allocation2 + $0x9b0] sm:$0xff] }
  0xfe   :  { %784 = vst [vmem:[#allocation5 + $0x7b8] sm:$0xff] %v272_v55  ;;  %v336_v55 = vld [vmem:[#allocation2 + $0x9b8] sm:$0xff] }
  0xff   :  { %785 = vst [vmem:[#allocation5 + $0x7c0] sm:$0xff] %v273_v56  ;;  %v337_v56 = vld [vmem:[#allocation2 + $0x9c0] sm:$0xff] }
 0x100   :  { %786 = vst [vmem:[#allocation5 + $0x7c8] sm:$0xff] %v274_v57  ;;  %v338_v57 = vld [vmem:[#allocation2 + $0x9c8] sm:$0xff] }
 0x101   :  { %787 = vst [vmem:[#allocation5 + $0x7d0] sm:$0xff] %v275_v58  ;;  %v339_v58 = vld [vmem:[#allocation2 + $0x9d0] sm:$0xff] }
 0x102   :  { %788 = vst [vmem:[#allocation5 + $0x7d8] sm:$0xff] %v276_v59  ;;  %v340_v59 = vld [vmem:[#allocation2 + $0x9d8] sm:$0xff] }
 0x103   :  { %789 = vst [vmem:[#allocation5 + $0x7e0] sm:$0xff] %v277_v60  ;;  %v341_v60 = vld [vmem:[#allocation2 + $0x9e0] sm:$0xff] }
 0x104   :  { %790 = vst [vmem:[#allocation5 + $0x7e8] sm:$0xff] %v278_v61  ;;  %v342_v61 = vld [vmem:[#allocation2 + $0x9e8] sm:$0xff] }
 0x105   :  { %791 = vst [vmem:[#allocation5 + $0x7f0] sm:$0xff] %v279_v62  ;;  %v343_v62 = vld [vmem:[#allocation2 + $0x9f0] sm:$0xff] }
 0x106   :  { %792 = vst [vmem:[#allocation5 + $0x7f8] sm:$0xff] %v280_v63  ;;  %v344_v63 = vld [vmem:[#allocation2 + $0x9f8] sm:$0xff] }
 0x107   :  { %793 = vst [vmem:[#allocation5 + $0x800] sm:$0xff] %v281_v0  ;;  %v345_v0 = vld [vmem:[#allocation2 + $0xa00] sm:$0xff] }
 0x108   :  { %794 = vst [vmem:[#allocation5 + $0x808] sm:$0xff] %v282_v1  ;;  %v346_v1 = vld [vmem:[#allocation2 + $0xa08] sm:$0xff] }
 0x109   :  { %795 = vst [vmem:[#allocation5 + $0x810] sm:$0xff] %v283_v2  ;;  %v347_v2 = vld [vmem:[#allocation2 + $0xa10] sm:$0xff] }
 0x10a   :  { %796 = vst [vmem:[#allocation5 + $0x818] sm:$0xff] %v284_v3  ;;  %v348_v3 = vld [vmem:[#allocation2 + $0xa18] sm:$0xff] }
 0x10b   :  { %797 = vst [vmem:[#allocation5 + $0x820] sm:$0xff] %v285_v4  ;;  %v349_v4 = vld [vmem:[#allocation2 + $0xa20] sm:$0xff] }
 0x10c   :  { %798 = vst [vmem:[#allocation5 + $0x828] sm:$0xff] %v286_v5  ;;  %v350_v5 = vld [vmem:[#allocation2 + $0xa28] sm:$0xff] }
 0x10d   :  { %799 = vst [vmem:[#allocation5 + $0x830] sm:$0xff] %v287_v6  ;;  %v351_v6 = vld [vmem:[#allocation2 + $0xa30] sm:$0xff] }
 0x10e   :  { %800 = vst [vmem:[#allocation5 + $0x838] sm:$0xff] %v288_v7  ;;  %v352_v7 = vld [vmem:[#allocation2 + $0xa38] sm:$0xff] }
 0x10f   :  { %801 = vst [vmem:[#allocation5 + $0x840] sm:$0xff] %v289_v8  ;;  %v353_v8 = vld [vmem:[#allocation2 + $0xa40] sm:$0xff] }
 0x110   :  { %802 = vst [vmem:[#allocation5 + $0x848] sm:$0xff] %v290_v9  ;;  %v354_v9 = vld [vmem:[#allocation2 + $0xa48] sm:$0xff] }
 0x111   :  { %803 = vst [vmem:[#allocation5 + $0x850] sm:$0xff] %v291_v10  ;;  %v355_v10 = vld [vmem:[#allocation2 + $0xa50] sm:$0xff] }
 0x112   :  { %804 = vst [vmem:[#allocation5 + $0x858] sm:$0xff] %v292_v11  ;;  %v356_v11 = vld [vmem:[#allocation2 + $0xa58] sm:$0xff] }
 0x113   :  { %805 = vst [vmem:[#allocation5 + $0x860] sm:$0xff] %v293_v12  ;;  %v357_v12 = vld [vmem:[#allocation2 + $0xa60] sm:$0xff] }
 0x114   :  { %806 = vst [vmem:[#allocation5 + $0x868] sm:$0xff] %v294_v13  ;;  %v358_v13 = vld [vmem:[#allocation2 + $0xa68] sm:$0xff] }
 0x115   :  { %807 = vst [vmem:[#allocation5 + $0x870] sm:$0xff] %v295_v14  ;;  %v359_v14 = vld [vmem:[#allocation2 + $0xa70] sm:$0xff] }
 0x116   :  { %808 = vst [vmem:[#allocation5 + $0x878] sm:$0xff] %v296_v15  ;;  %v360_v15 = vld [vmem:[#allocation2 + $0xa78] sm:$0xff] }
 0x117   :  { %809 = vst [vmem:[#allocation5 + $0x880] sm:$0xff] %v297_v16  ;;  %v361_v16 = vld [vmem:[#allocation2 + $0xa80] sm:$0xff] }
 0x118   :  { %810 = vst [vmem:[#allocation5 + $0x888] sm:$0xff] %v298_v17  ;;  %v362_v17 = vld [vmem:[#allocation2 + $0xa88] sm:$0xff] }
 0x119   :  { %811 = vst [vmem:[#allocation5 + $0x890] sm:$0xff] %v299_v18  ;;  %v363_v18 = vld [vmem:[#allocation2 + $0xa90] sm:$0xff] }
 0x11a   :  { %812 = vst [vmem:[#allocation5 + $0x898] sm:$0xff] %v300_v19  ;;  %v364_v19 = vld [vmem:[#allocation2 + $0xa98] sm:$0xff] }
 0x11b   :  { %813 = vst [vmem:[#allocation5 + $0x8a0] sm:$0xff] %v301_v20  ;;  %v365_v20 = vld [vmem:[#allocation2 + $0xaa0] sm:$0xff] }
 0x11c   :  { %814 = vst [vmem:[#allocation5 + $0x8a8] sm:$0xff] %v302_v21  ;;  %v366_v21 = vld [vmem:[#allocation2 + $0xaa8] sm:$0xff] }
 0x11d   :  { %815 = vst [vmem:[#allocation5 + $0x8b0] sm:$0xff] %v303_v22  ;;  %v367_v22 = vld [vmem:[#allocation2 + $0xab0] sm:$0xff] }
 0x11e   :  { %816 = vst [vmem:[#allocation5 + $0x8b8] sm:$0xff] %v304_v23  ;;  %v368_v23 = vld [vmem:[#allocation2 + $0xab8] sm:$0xff] }
 0x11f   :  { %817 = vst [vmem:[#allocation5 + $0x8c0] sm:$0xff] %v305_v24  ;;  %v369_v24 = vld [vmem:[#allocation2 + $0xac0] sm:$0xff] }
 0x120   :  { %818 = vst [vmem:[#allocation5 + $0x8c8] sm:$0xff] %v306_v25  ;;  %v370_v25 = vld [vmem:[#allocation2 + $0xac8] sm:$0xff] }
 0x121   :  { %819 = vst [vmem:[#allocation5 + $0x8d0] sm:$0xff] %v307_v26  ;;  %v371_v26 = vld [vmem:[#allocation2 + $0xad0] sm:$0xff] }
 0x122   :  { %820 = vst [vmem:[#allocation5 + $0x8d8] sm:$0xff] %v308_v27  ;;  %v372_v27 = vld [vmem:[#allocation2 + $0xad8] sm:$0xff] }
 0x123   :  { %821 = vst [vmem:[#allocation5 + $0x8e0] sm:$0xff] %v309_v28  ;;  %v373_v28 = vld [vmem:[#allocation2 + $0xae0] sm:$0xff] }
 0x124   :  { %822 = vst [vmem:[#allocation5 + $0x8e8] sm:$0xff] %v310_v29  ;;  %v374_v29 = vld [vmem:[#allocation2 + $0xae8] sm:$0xff] }
 0x125   :  { %823 = vst [vmem:[#allocation5 + $0x8f0] sm:$0xff] %v311_v30  ;;  %v375_v30 = vld [vmem:[#allocation2 + $0xaf0] sm:$0xff] }
 0x126   :  { %824 = vst [vmem:[#allocation5 + $0x8f8] sm:$0xff] %v312_v31  ;;  %v376_v31 = vld [vmem:[#allocation2 + $0xaf8] sm:$0xff] }
 0x127   :  { %825 = vst [vmem:[#allocation5 + $0x900] sm:$0xff] %v313_v32  ;;  %v377_v32 = vld [vmem:[#allocation2 + $0xb00] sm:$0xff] }
 0x128   :  { %826 = vst [vmem:[#allocation5 + $0x908] sm:$0xff] %v314_v33  ;;  %v378_v33 = vld [vmem:[#allocation2 + $0xb08] sm:$0xff] }
 0x129   :  { %827 = vst [vmem:[#allocation5 + $0x910] sm:$0xff] %v315_v34  ;;  %v379_v34 = vld [vmem:[#allocation2 + $0xb10] sm:$0xff] }
 0x12a   :  { %828 = vst [vmem:[#allocation5 + $0x918] sm:$0xff] %v316_v35  ;;  %v380_v35 = vld [vmem:[#allocation2 + $0xb18] sm:$0xff] }
 0x12b   :  { %829 = vst [vmem:[#allocation5 + $0x920] sm:$0xff] %v317_v36  ;;  %v381_v36 = vld [vmem:[#allocation2 + $0xb20] sm:$0xff] }
 0x12c   :  { %830 = vst [vmem:[#allocation5 + $0x928] sm:$0xff] %v318_v37  ;;  %v382_v37 = vld [vmem:[#allocation2 + $0xb28] sm:$0xff] }
 0x12d   :  { %831 = vst [vmem:[#allocation5 + $0x930] sm:$0xff] %v319_v38  ;;  %v383_v38 = vld [vmem:[#allocation2 + $0xb30] sm:$0xff] }
 0x12e   :  { %832 = vst [vmem:[#allocation5 + $0x938] sm:$0xff] %v320_v39  ;;  %v384_v39 = vld [vmem:[#allocation2 + $0xb38] sm:$0xff] }
 0x12f   :  { %833 = vst [vmem:[#allocation5 + $0x940] sm:$0xff] %v321_v40  ;;  %v385_v40 = vld [vmem:[#allocation2 + $0xb40] sm:$0xff] }
 0x130   :  { %834 = vst [vmem:[#allocation5 + $0x948] sm:$0xff] %v322_v41  ;;  %v386_v41 = vld [vmem:[#allocation2 + $0xb48] sm:$0xff] }
 0x131   :  { %835 = vst [vmem:[#allocation5 + $0x950] sm:$0xff] %v323_v42  ;;  %v387_v42 = vld [vmem:[#allocation2 + $0xb50] sm:$0xff] }
 0x132   :  { %836 = vst [vmem:[#allocation5 + $0x958] sm:$0xff] %v324_v43  ;;  %v388_v43 = vld [vmem:[#allocation2 + $0xb58] sm:$0xff] }
 0x133   :  { %837 = vst [vmem:[#allocation5 + $0x960] sm:$0xff] %v325_v44  ;;  %v389_v44 = vld [vmem:[#allocation2 + $0xb60] sm:$0xff] }
 0x134   :  { %838 = vst [vmem:[#allocation5 + $0x968] sm:$0xff] %v326_v45  ;;  %v390_v45 = vld [vmem:[#allocation2 + $0xb68] sm:$0xff] }
 0x135   :  { %839 = vst [vmem:[#allocation5 + $0x970] sm:$0xff] %v327_v46  ;;  %v391_v46 = vld [vmem:[#allocation2 + $0xb70] sm:$0xff] }
 0x136   :  { %840 = vst [vmem:[#allocation5 + $0x978] sm:$0xff] %v328_v47  ;;  %v392_v47 = vld [vmem:[#allocation2 + $0xb78] sm:$0xff] }
 0x137   :  { %841 = vst [vmem:[#allocation5 + $0x980] sm:$0xff] %v329_v48  ;;  %v393_v48 = vld [vmem:[#allocation2 + $0xb80] sm:$0xff] }
 0x138   :  { %842 = vst [vmem:[#allocation5 + $0x988] sm:$0xff] %v330_v49  ;;  %v394_v49 = vld [vmem:[#allocation2 + $0xb88] sm:$0xff] }
 0x139   :  { %843 = vst [vmem:[#allocation5 + $0x990] sm:$0xff] %v331_v50  ;;  %v395_v50 = vld [vmem:[#allocation2 + $0xb90] sm:$0xff] }
 0x13a   :  { %844 = vst [vmem:[#allocation5 + $0x998] sm:$0xff] %v332_v51  ;;  %v396_v51 = vld [vmem:[#allocation2 + $0xb98] sm:$0xff] }
 0x13b   :  { %845 = vst [vmem:[#allocation5 + $0x9a0] sm:$0xff] %v333_v52  ;;  %v397_v52 = vld [vmem:[#allocation2 + $0xba0] sm:$0xff] }
 0x13c   :  { %846 = vst [vmem:[#allocation5 + $0x9a8] sm:$0xff] %v334_v53  ;;  %v398_v53 = vld [vmem:[#allocation2 + $0xba8] sm:$0xff] }
 0x13d   :  { %847 = vst [vmem:[#allocation5 + $0x9b0] sm:$0xff] %v335_v54  ;;  %v399_v54 = vld [vmem:[#allocation2 + $0xbb0] sm:$0xff] }
 0x13e   :  { %848 = vst [vmem:[#allocation5 + $0x9b8] sm:$0xff] %v336_v55  ;;  %v400_v55 = vld [vmem:[#allocation2 + $0xbb8] sm:$0xff] }
 0x13f   :  { %849 = vst [vmem:[#allocation5 + $0x9c0] sm:$0xff] %v337_v56  ;;  %v401_v56 = vld [vmem:[#allocation2 + $0xbc0] sm:$0xff] }
 0x140   :  { %850 = vst [vmem:[#allocation5 + $0x9c8] sm:$0xff] %v338_v57  ;;  %v402_v57 = vld [vmem:[#allocation2 + $0xbc8] sm:$0xff] }
 0x141   :  { %851 = vst [vmem:[#allocation5 + $0x9d0] sm:$0xff] %v339_v58  ;;  %v403_v58 = vld [vmem:[#allocation2 + $0xbd0] sm:$0xff] }
 0x142   :  { %852 = vst [vmem:[#allocation5 + $0x9d8] sm:$0xff] %v340_v59  ;;  %v404_v59 = vld [vmem:[#allocation2 + $0xbd8] sm:$0xff] }
 0x143   :  { %853 = vst [vmem:[#allocation5 + $0x9e0] sm:$0xff] %v341_v60  ;;  %v405_v60 = vld [vmem:[#allocation2 + $0xbe0] sm:$0xff] }
 0x144   :  { %854 = vst [vmem:[#allocation5 + $0x9e8] sm:$0xff] %v342_v61  ;;  %v406_v61 = vld [vmem:[#allocation2 + $0xbe8] sm:$0xff] }
 0x145   :  { %855 = vst [vmem:[#allocation5 + $0x9f0] sm:$0xff] %v343_v62  ;;  %v407_v62 = vld [vmem:[#allocation2 + $0xbf0] sm:$0xff] }
 0x146   :  { %856 = vst [vmem:[#allocation5 + $0x9f8] sm:$0xff] %v344_v63  ;;  %v408_v63 = vld [vmem:[#allocation2 + $0xbf8] sm:$0xff] }
 0x147   :  { %857 = vst [vmem:[#allocation5 + $0xa00] sm:$0xff] %v345_v0  ;;  %v409_v0 = vld [vmem:[#allocation2 + $0xc00] sm:$0xff] }
 0x148   :  { %858 = vst [vmem:[#allocation5 + $0xa08] sm:$0xff] %v346_v1  ;;  %v410_v1 = vld [vmem:[#allocation2 + $0xc08] sm:$0xff] }
 0x149   :  { %859 = vst [vmem:[#allocation5 + $0xa10] sm:$0xff] %v347_v2  ;;  %v411_v2 = vld [vmem:[#allocation2 + $0xc10] sm:$0xff] }
 0x14a   :  { %860 = vst [vmem:[#allocation5 + $0xa18] sm:$0xff] %v348_v3  ;;  %v412_v3 = vld [vmem:[#allocation2 + $0xc18] sm:$0xff] }
 0x14b   :  { %861 = vst [vmem:[#allocation5 + $0xa20] sm:$0xff] %v349_v4  ;;  %v413_v4 = vld [vmem:[#allocation2 + $0xc20] sm:$0xff] }
 0x14c   :  { %862 = vst [vmem:[#allocation5 + $0xa28] sm:$0xff] %v350_v5  ;;  %v414_v5 = vld [vmem:[#allocation2 + $0xc28] sm:$0xff] }
 0x14d   :  { %863 = vst [vmem:[#allocation5 + $0xa30] sm:$0xff] %v351_v6  ;;  %v415_v6 = vld [vmem:[#allocation2 + $0xc30] sm:$0xff] }
 0x14e   :  { %864 = vst [vmem:[#allocation5 + $0xa38] sm:$0xff] %v352_v7  ;;  %v416_v7 = vld [vmem:[#allocation2 + $0xc38] sm:$0xff] }
 0x14f   :  { %865 = vst [vmem:[#allocation5 + $0xa40] sm:$0xff] %v353_v8  ;;  %v417_v8 = vld [vmem:[#allocation2 + $0xc40] sm:$0xff] }
 0x150   :  { %866 = vst [vmem:[#allocation5 + $0xa48] sm:$0xff] %v354_v9  ;;  %v418_v9 = vld [vmem:[#allocation2 + $0xc48] sm:$0xff] }
 0x151   :  { %867 = vst [vmem:[#allocation5 + $0xa50] sm:$0xff] %v355_v10  ;;  %v419_v10 = vld [vmem:[#allocation2 + $0xc50] sm:$0xff] }
 0x152   :  { %868 = vst [vmem:[#allocation5 + $0xa58] sm:$0xff] %v356_v11  ;;  %v420_v11 = vld [vmem:[#allocation2 + $0xc58] sm:$0xff] }
 0x153   :  { %869 = vst [vmem:[#allocation5 + $0xa60] sm:$0xff] %v357_v12  ;;  %v421_v12 = vld [vmem:[#allocation2 + $0xc60] sm:$0xff] }
 0x154   :  { %870 = vst [vmem:[#allocation5 + $0xa68] sm:$0xff] %v358_v13  ;;  %v422_v13 = vld [vmem:[#allocation2 + $0xc68] sm:$0xff] }
 0x155   :  { %871 = vst [vmem:[#allocation5 + $0xa70] sm:$0xff] %v359_v14  ;;  %v423_v14 = vld [vmem:[#allocation2 + $0xc70] sm:$0xff] }
 0x156   :  { %872 = vst [vmem:[#allocation5 + $0xa78] sm:$0xff] %v360_v15  ;;  %v424_v15 = vld [vmem:[#allocation2 + $0xc78] sm:$0xff] }
 0x157   :  { %873 = vst [vmem:[#allocation5 + $0xa80] sm:$0xff] %v361_v16  ;;  %v425_v16 = vld [vmem:[#allocation2 + $0xc80] sm:$0xff] }
 0x158   :  { %874 = vst [vmem:[#allocation5 + $0xa88] sm:$0xff] %v362_v17  ;;  %v426_v17 = vld [vmem:[#allocation2 + $0xc88] sm:$0xff] }
 0x159   :  { %875 = vst [vmem:[#allocation5 + $0xa90] sm:$0xff] %v363_v18  ;;  %v427_v18 = vld [vmem:[#allocation2 + $0xc90] sm:$0xff] }
 0x15a   :  { %876 = vst [vmem:[#allocation5 + $0xa98] sm:$0xff] %v364_v19  ;;  %v428_v19 = vld [vmem:[#allocation2 + $0xc98] sm:$0xff] }
 0x15b   :  { %877 = vst [vmem:[#allocation5 + $0xaa0] sm:$0xff] %v365_v20  ;;  %v429_v20 = vld [vmem:[#allocation2 + $0xca0] sm:$0xff] }
 0x15c   :  { %878 = vst [vmem:[#allocation5 + $0xaa8] sm:$0xff] %v366_v21  ;;  %v430_v21 = vld [vmem:[#allocation2 + $0xca8] sm:$0xff] }
 0x15d   :  { %879 = vst [vmem:[#allocation5 + $0xab0] sm:$0xff] %v367_v22  ;;  %v431_v22 = vld [vmem:[#allocation2 + $0xcb0] sm:$0xff] }
 0x15e   :  { %880 = vst [vmem:[#allocation5 + $0xab8] sm:$0xff] %v368_v23  ;;  %v432_v23 = vld [vmem:[#allocation2 + $0xcb8] sm:$0xff] }
 0x15f   :  { %881 = vst [vmem:[#allocation5 + $0xac0] sm:$0xff] %v369_v24  ;;  %v433_v24 = vld [vmem:[#allocation2 + $0xcc0] sm:$0xff] }
 0x160   :  { %882 = vst [vmem:[#allocation5 + $0xac8] sm:$0xff] %v370_v25  ;;  %v434_v25 = vld [vmem:[#allocation2 + $0xcc8] sm:$0xff] }
 0x161   :  { %883 = vst [vmem:[#allocation5 + $0xad0] sm:$0xff] %v371_v26  ;;  %v435_v26 = vld [vmem:[#allocation2 + $0xcd0] sm:$0xff] }
 0x162   :  { %884 = vst [vmem:[#allocation5 + $0xad8] sm:$0xff] %v372_v27  ;;  %v436_v27 = vld [vmem:[#allocation2 + $0xcd8] sm:$0xff] }
 0x163   :  { %885 = vst [vmem:[#allocation5 + $0xae0] sm:$0xff] %v373_v28  ;;  %v437_v28 = vld [vmem:[#allocation2 + $0xce0] sm:$0xff] }
 0x164   :  { %886 = vst [vmem:[#allocation5 + $0xae8] sm:$0xff] %v374_v29  ;;  %v438_v29 = vld [vmem:[#allocation2 + $0xce8] sm:$0xff] }
 0x165   :  { %887 = vst [vmem:[#allocation5 + $0xaf0] sm:$0xff] %v375_v30  ;;  %v439_v30 = vld [vmem:[#allocation2 + $0xcf0] sm:$0xff] }
 0x166   :  { %888 = vst [vmem:[#allocation5 + $0xaf8] sm:$0xff] %v376_v31  ;;  %v440_v31 = vld [vmem:[#allocation2 + $0xcf8] sm:$0xff] }
 0x167   :  { %889 = vst [vmem:[#allocation5 + $0xb00] sm:$0xff] %v377_v32  ;;  %v441_v32 = vld [vmem:[#allocation2 + $0xd00] sm:$0xff] }
 0x168   :  { %890 = vst [vmem:[#allocation5 + $0xb08] sm:$0xff] %v378_v33  ;;  %v442_v33 = vld [vmem:[#allocation2 + $0xd08] sm:$0xff] }
 0x169   :  { %891 = vst [vmem:[#allocation5 + $0xb10] sm:$0xff] %v379_v34  ;;  %v443_v34 = vld [vmem:[#allocation2 + $0xd10] sm:$0xff] }
 0x16a   :  { %892 = vst [vmem:[#allocation5 + $0xb18] sm:$0xff] %v380_v35  ;;  %v444_v35 = vld [vmem:[#allocation2 + $0xd18] sm:$0xff] }
 0x16b   :  { %893 = vst [vmem:[#allocation5 + $0xb20] sm:$0xff] %v381_v36  ;;  %v445_v36 = vld [vmem:[#allocation2 + $0xd20] sm:$0xff] }
 0x16c   :  { %894 = vst [vmem:[#allocation5 + $0xb28] sm:$0xff] %v382_v37  ;;  %v446_v37 = vld [vmem:[#allocation2 + $0xd28] sm:$0xff] }
 0x16d   :  { %895 = vst [vmem:[#allocation5 + $0xb30] sm:$0xff] %v383_v38  ;;  %v447_v38 = vld [vmem:[#allocation2 + $0xd30] sm:$0xff] }
 0x16e   :  { %896 = vst [vmem:[#allocation5 + $0xb38] sm:$0xff] %v384_v39  ;;  %v448_v39 = vld [vmem:[#allocation2 + $0xd38] sm:$0xff] }
 0x16f   :  { %897 = vst [vmem:[#allocation5 + $0xb40] sm:$0xff] %v385_v40  ;;  %v449_v40 = vld [vmem:[#allocation2 + $0xd40] sm:$0xff] }
 0x170   :  { %898 = vst [vmem:[#allocation5 + $0xb48] sm:$0xff] %v386_v41  ;;  %v450_v41 = vld [vmem:[#allocation2 + $0xd48] sm:$0xff] }
 0x171   :  { %899 = vst [vmem:[#allocation5 + $0xb50] sm:$0xff] %v387_v42  ;;  %v451_v42 = vld [vmem:[#allocation2 + $0xd50] sm:$0xff] }
 0x172   :  { %900 = vst [vmem:[#allocation5 + $0xb58] sm:$0xff] %v388_v43  ;;  %v452_v43 = vld [vmem:[#allocation2 + $0xd58] sm:$0xff] }
 0x173   :  { %901 = vst [vmem:[#allocation5 + $0xb60] sm:$0xff] %v389_v44  ;;  %v453_v44 = vld [vmem:[#allocation2 + $0xd60] sm:$0xff] }
 0x174   :  { %902 = vst [vmem:[#allocation5 + $0xb68] sm:$0xff] %v390_v45  ;;  %v454_v45 = vld [vmem:[#allocation2 + $0xd68] sm:$0xff] }
 0x175   :  { %903 = vst [vmem:[#allocation5 + $0xb70] sm:$0xff] %v391_v46  ;;  %v455_v46 = vld [vmem:[#allocation2 + $0xd70] sm:$0xff] }
 0x176   :  { %904 = vst [vmem:[#allocation5 + $0xb78] sm:$0xff] %v392_v47  ;;  %v456_v47 = vld [vmem:[#allocation2 + $0xd78] sm:$0xff] }
 0x177   :  { %905 = vst [vmem:[#allocation5 + $0xb80] sm:$0xff] %v393_v48  ;;  %v457_v48 = vld [vmem:[#allocation2 + $0xd80] sm:$0xff] }
 0x178   :  { %906 = vst [vmem:[#allocation5 + $0xb88] sm:$0xff] %v394_v49  ;;  %v458_v49 = vld [vmem:[#allocation2 + $0xd88] sm:$0xff] }
 0x179   :  { %907 = vst [vmem:[#allocation5 + $0xb90] sm:$0xff] %v395_v50  ;;  %v459_v50 = vld [vmem:[#allocation2 + $0xd90] sm:$0xff] }
 0x17a   :  { %908 = vst [vmem:[#allocation5 + $0xb98] sm:$0xff] %v396_v51  ;;  %v460_v51 = vld [vmem:[#allocation2 + $0xd98] sm:$0xff] }
 0x17b   :  { %909 = vst [vmem:[#allocation5 + $0xba0] sm:$0xff] %v397_v52  ;;  %v461_v52 = vld [vmem:[#allocation2 + $0xda0] sm:$0xff] }
 0x17c   :  { %910 = vst [vmem:[#allocation5 + $0xba8] sm:$0xff] %v398_v53  ;;  %v462_v53 = vld [vmem:[#allocation2 + $0xda8] sm:$0xff] }
 0x17d   :  { %911 = vst [vmem:[#allocation5 + $0xbb0] sm:$0xff] %v399_v54  ;;  %v463_v54 = vld [vmem:[#allocation2 + $0xdb0] sm:$0xff] }
 0x17e   :  { %912 = vst [vmem:[#allocation5 + $0xbb8] sm:$0xff] %v400_v55  ;;  %v464_v55 = vld [vmem:[#allocation2 + $0xdb8] sm:$0xff] }
 0x17f   :  { %913 = vst [vmem:[#allocation5 + $0xbc0] sm:$0xff] %v401_v56  ;;  %v465_v56 = vld [vmem:[#allocation2 + $0xdc0] sm:$0xff] }
 0x180   :  { %914 = vst [vmem:[#allocation5 + $0xbc8] sm:$0xff] %v402_v57  ;;  %v466_v57 = vld [vmem:[#allocation2 + $0xdc8] sm:$0xff] }
 0x181   :  { %915 = vst [vmem:[#allocation5 + $0xbd0] sm:$0xff] %v403_v58  ;;  %v467_v58 = vld [vmem:[#allocation2 + $0xdd0] sm:$0xff] }
 0x182   :  { %916 = vst [vmem:[#allocation5 + $0xbd8] sm:$0xff] %v404_v59  ;;  %v468_v59 = vld [vmem:[#allocation2 + $0xdd8] sm:$0xff] }
 0x183   :  { %917 = vst [vmem:[#allocation5 + $0xbe0] sm:$0xff] %v405_v60  ;;  %v469_v60 = vld [vmem:[#allocation2 + $0xde0] sm:$0xff] }
 0x184   :  { %918 = vst [vmem:[#allocation5 + $0xbe8] sm:$0xff] %v406_v61  ;;  %v470_v61 = vld [vmem:[#allocation2 + $0xde8] sm:$0xff] }
 0x185   :  { %919 = vst [vmem:[#allocation5 + $0xbf0] sm:$0xff] %v407_v62  ;;  %v471_v62 = vld [vmem:[#allocation2 + $0xdf0] sm:$0xff] }
 0x186   :  { %920 = vst [vmem:[#allocation5 + $0xbf8] sm:$0xff] %v408_v63  ;;  %v472_v63 = vld [vmem:[#allocation2 + $0xdf8] sm:$0xff] }
 0x187   :  { %921 = vst [vmem:[#allocation5 + $0xc00] sm:$0xff] %v409_v0  ;;  %v473_v0 = vld [vmem:[#allocation2 + $0xe00] sm:$0xff] }
 0x188   :  { %922 = vst [vmem:[#allocation5 + $0xc08] sm:$0xff] %v410_v1  ;;  %v474_v1 = vld [vmem:[#allocation2 + $0xe08] sm:$0xff] }
 0x189   :  { %923 = vst [vmem:[#allocation5 + $0xc10] sm:$0xff] %v411_v2  ;;  %v475_v2 = vld [vmem:[#allocation2 + $0xe10] sm:$0xff] }
 0x18a   :  { %924 = vst [vmem:[#allocation5 + $0xc18] sm:$0xff] %v412_v3  ;;  %v476_v3 = vld [vmem:[#allocation2 + $0xe18] sm:$0xff] }
 0x18b   :  { %925 = vst [vmem:[#allocation5 + $0xc20] sm:$0xff] %v413_v4  ;;  %v477_v4 = vld [vmem:[#allocation2 + $0xe20] sm:$0xff] }
 0x18c   :  { %926 = vst [vmem:[#allocation5 + $0xc28] sm:$0xff] %v414_v5  ;;  %v478_v5 = vld [vmem:[#allocation2 + $0xe28] sm:$0xff] }
 0x18d   :  { %927 = vst [vmem:[#allocation5 + $0xc30] sm:$0xff] %v415_v6  ;;  %v479_v6 = vld [vmem:[#allocation2 + $0xe30] sm:$0xff] }
 0x18e   :  { %928 = vst [vmem:[#allocation5 + $0xc38] sm:$0xff] %v416_v7  ;;  %v480_v7 = vld [vmem:[#allocation2 + $0xe38] sm:$0xff] }
 0x18f   :  { %929 = vst [vmem:[#allocation5 + $0xc40] sm:$0xff] %v417_v8  ;;  %v481_v8 = vld [vmem:[#allocation2 + $0xe40] sm:$0xff] }
 0x190   :  { %930 = vst [vmem:[#allocation5 + $0xc48] sm:$0xff] %v418_v9  ;;  %v482_v9 = vld [vmem:[#allocation2 + $0xe48] sm:$0xff] }
 0x191   :  { %931 = vst [vmem:[#allocation5 + $0xc50] sm:$0xff] %v419_v10  ;;  %v483_v10 = vld [vmem:[#allocation2 + $0xe50] sm:$0xff] }
 0x192   :  { %932 = vst [vmem:[#allocation5 + $0xc58] sm:$0xff] %v420_v11  ;;  %v484_v11 = vld [vmem:[#allocation2 + $0xe58] sm:$0xff] }
 0x193   :  { %933 = vst [vmem:[#allocation5 + $0xc60] sm:$0xff] %v421_v12  ;;  %v485_v12 = vld [vmem:[#allocation2 + $0xe60] sm:$0xff] }
 0x194   :  { %934 = vst [vmem:[#allocation5 + $0xc68] sm:$0xff] %v422_v13  ;;  %v486_v13 = vld [vmem:[#allocation2 + $0xe68] sm:$0xff] }
 0x195   :  { %935 = vst [vmem:[#allocation5 + $0xc70] sm:$0xff] %v423_v14  ;;  %v487_v14 = vld [vmem:[#allocation2 + $0xe70] sm:$0xff] }
 0x196   :  { %936 = vst [vmem:[#allocation5 + $0xc78] sm:$0xff] %v424_v15  ;;  %v488_v15 = vld [vmem:[#allocation2 + $0xe78] sm:$0xff] }
 0x197   :  { %937 = vst [vmem:[#allocation5 + $0xc80] sm:$0xff] %v425_v16  ;;  %v489_v16 = vld [vmem:[#allocation2 + $0xe80] sm:$0xff] }
 0x198   :  { %938 = vst [vmem:[#allocation5 + $0xc88] sm:$0xff] %v426_v17  ;;  %v490_v17 = vld [vmem:[#allocation2 + $0xe88] sm:$0xff] }
 0x199   :  { %939 = vst [vmem:[#allocation5 + $0xc90] sm:$0xff] %v427_v18  ;;  %v491_v18 = vld [vmem:[#allocation2 + $0xe90] sm:$0xff] }
 0x19a   :  { %940 = vst [vmem:[#allocation5 + $0xc98] sm:$0xff] %v428_v19  ;;  %v492_v19 = vld [vmem:[#allocation2 + $0xe98] sm:$0xff] }
 0x19b   :  { %941 = vst [vmem:[#allocation5 + $0xca0] sm:$0xff] %v429_v20  ;;  %v493_v20 = vld [vmem:[#allocation2 + $0xea0] sm:$0xff] }
 0x19c   :  { %942 = vst [vmem:[#allocation5 + $0xca8] sm:$0xff] %v430_v21  ;;  %v494_v21 = vld [vmem:[#allocation2 + $0xea8] sm:$0xff] }
 0x19d   :  { %943 = vst [vmem:[#allocation5 + $0xcb0] sm:$0xff] %v431_v22  ;;  %v495_v22 = vld [vmem:[#allocation2 + $0xeb0] sm:$0xff] }
 0x19e   :  { %944 = vst [vmem:[#allocation5 + $0xcb8] sm:$0xff] %v432_v23  ;;  %v496_v23 = vld [vmem:[#allocation2 + $0xeb8] sm:$0xff] }
 0x19f   :  { %945 = vst [vmem:[#allocation5 + $0xcc0] sm:$0xff] %v433_v24  ;;  %v497_v24 = vld [vmem:[#allocation2 + $0xec0] sm:$0xff] }
 0x1a0   :  { %946 = vst [vmem:[#allocation5 + $0xcc8] sm:$0xff] %v434_v25  ;;  %v498_v25 = vld [vmem:[#allocation2 + $0xec8] sm:$0xff] }
 0x1a1   :  { %947 = vst [vmem:[#allocation5 + $0xcd0] sm:$0xff] %v435_v26  ;;  %v499_v26 = vld [vmem:[#allocation2 + $0xed0] sm:$0xff] }
 0x1a2   :  { %948 = vst [vmem:[#allocation5 + $0xcd8] sm:$0xff] %v436_v27  ;;  %v500_v27 = vld [vmem:[#allocation2 + $0xed8] sm:$0xff] }
 0x1a3   :  { %949 = vst [vmem:[#allocation5 + $0xce0] sm:$0xff] %v437_v28  ;;  %v501_v28 = vld [vmem:[#allocation2 + $0xee0] sm:$0xff] }
 0x1a4   :  { %950 = vst [vmem:[#allocation5 + $0xce8] sm:$0xff] %v438_v29  ;;  %v502_v29 = vld [vmem:[#allocation2 + $0xee8] sm:$0xff] }
 0x1a5   :  { %951 = vst [vmem:[#allocation5 + $0xcf0] sm:$0xff] %v439_v30  ;;  %v503_v30 = vld [vmem:[#allocation2 + $0xef0] sm:$0xff] }
 0x1a6   :  { %952 = vst [vmem:[#allocation5 + $0xcf8] sm:$0xff] %v440_v31  ;;  %v504_v31 = vld [vmem:[#allocation2 + $0xef8] sm:$0xff] }
 0x1a7   :  { %953 = vst [vmem:[#allocation5 + $0xd00] sm:$0xff] %v441_v32  ;;  %v505_v32 = vld [vmem:[#allocation2 + $0xf00] sm:$0xff] }
 0x1a8   :  { %954 = vst [vmem:[#allocation5 + $0xd08] sm:$0xff] %v442_v33  ;;  %v506_v33 = vld [vmem:[#allocation2 + $0xf08] sm:$0xff] }
 0x1a9   :  { %955 = vst [vmem:[#allocation5 + $0xd10] sm:$0xff] %v443_v34  ;;  %v507_v34 = vld [vmem:[#allocation2 + $0xf10] sm:$0xff] }
 0x1aa   :  { %956 = vst [vmem:[#allocation5 + $0xd18] sm:$0xff] %v444_v35  ;;  %v508_v35 = vld [vmem:[#allocation2 + $0xf18] sm:$0xff] }
 0x1ab   :  { %957 = vst [vmem:[#allocation5 + $0xd20] sm:$0xff] %v445_v36  ;;  %v509_v36 = vld [vmem:[#allocation2 + $0xf20] sm:$0xff] }
 0x1ac   :  { %958 = vst [vmem:[#allocation5 + $0xd28] sm:$0xff] %v446_v37  ;;  %v510_v37 = vld [vmem:[#allocation2 + $0xf28] sm:$0xff] }
 0x1ad   :  { %959 = vst [vmem:[#allocation5 + $0xd30] sm:$0xff] %v447_v38  ;;  %v511_v38 = vld [vmem:[#allocation2 + $0xf30] sm:$0xff] }
 0x1ae   :  { %960 = vst [vmem:[#allocation5 + $0xd38] sm:$0xff] %v448_v39  ;;  %v512_v39 = vld [vmem:[#allocation2 + $0xf38] sm:$0xff] }
 0x1af   :  { %961 = vst [vmem:[#allocation5 + $0xd40] sm:$0xff] %v449_v40  ;;  %v513_v40 = vld [vmem:[#allocation2 + $0xf40] sm:$0xff] }
 0x1b0   :  { %962 = vst [vmem:[#allocation5 + $0xd48] sm:$0xff] %v450_v41  ;;  %v514_v41 = vld [vmem:[#allocation2 + $0xf48] sm:$0xff] }
 0x1b1   :  { %963 = vst [vmem:[#allocation5 + $0xd50] sm:$0xff] %v451_v42  ;;  %v515_v42 = vld [vmem:[#allocation2 + $0xf50] sm:$0xff] }
 0x1b2   :  { %964 = vst [vmem:[#allocation5 + $0xd58] sm:$0xff] %v452_v43  ;;  %v516_v43 = vld [vmem:[#allocation2 + $0xf58] sm:$0xff] }
 0x1b3   :  { %965 = vst [vmem:[#allocation5 + $0xd60] sm:$0xff] %v453_v44  ;;  %v517_v44 = vld [vmem:[#allocation2 + $0xf60] sm:$0xff] }
 0x1b4   :  { %966 = vst [vmem:[#allocation5 + $0xd68] sm:$0xff] %v454_v45  ;;  %v518_v45 = vld [vmem:[#allocation2 + $0xf68] sm:$0xff] }
 0x1b5   :  { %967 = vst [vmem:[#allocation5 + $0xd70] sm:$0xff] %v455_v46  ;;  %v519_v46 = vld [vmem:[#allocation2 + $0xf70] sm:$0xff] }
 0x1b6   :  { %968 = vst [vmem:[#allocation5 + $0xd78] sm:$0xff] %v456_v47  ;;  %v520_v47 = vld [vmem:[#allocation2 + $0xf78] sm:$0xff] }
 0x1b7   :  { %969 = vst [vmem:[#allocation5 + $0xd80] sm:$0xff] %v457_v48  ;;  %v521_v48 = vld [vmem:[#allocation2 + $0xf80] sm:$0xff] }
 0x1b8   :  { %970 = vst [vmem:[#allocation5 + $0xd88] sm:$0xff] %v458_v49  ;;  %v522_v49 = vld [vmem:[#allocation2 + $0xf88] sm:$0xff] }
 0x1b9   :  { %971 = vst [vmem:[#allocation5 + $0xd90] sm:$0xff] %v459_v50  ;;  %v523_v50 = vld [vmem:[#allocation2 + $0xf90] sm:$0xff] }
 0x1ba   :  { %972 = vst [vmem:[#allocation5 + $0xd98] sm:$0xff] %v460_v51  ;;  %v524_v51 = vld [vmem:[#allocation2 + $0xf98] sm:$0xff] }
 0x1bb   :  { %973 = vst [vmem:[#allocation5 + $0xda0] sm:$0xff] %v461_v52  ;;  %v525_v52 = vld [vmem:[#allocation2 + $0xfa0] sm:$0xff] }
 0x1bc   :  { %974 = vst [vmem:[#allocation5 + $0xda8] sm:$0xff] %v462_v53  ;;  %v526_v53 = vld [vmem:[#allocation2 + $0xfa8] sm:$0xff] }
 0x1bd   :  { %975 = vst [vmem:[#allocation5 + $0xdb0] sm:$0xff] %v463_v54  ;;  %v527_v54 = vld [vmem:[#allocation2 + $0xfb0] sm:$0xff] }
 0x1be   :  { %976 = vst [vmem:[#allocation5 + $0xdb8] sm:$0xff] %v464_v55  ;;  %v528_v55 = vld [vmem:[#allocation2 + $0xfb8] sm:$0xff] }
 0x1bf   :  { %977 = vst [vmem:[#allocation5 + $0xdc0] sm:$0xff] %v465_v56  ;;  %v529_v56 = vld [vmem:[#allocation2 + $0xfc0] sm:$0xff] }
 0x1c0   :  { %978 = vst [vmem:[#allocation5 + $0xdc8] sm:$0xff] %v466_v57  ;;  %v530_v57 = vld [vmem:[#allocation2 + $0xfc8] sm:$0xff] }
 0x1c1   :  { %979 = vst [vmem:[#allocation5 + $0xdd0] sm:$0xff] %v467_v58  ;;  %v531_v58 = vld [vmem:[#allocation2 + $0xfd0] sm:$0xff] }
 0x1c2   :  { %980 = vst [vmem:[#allocation5 + $0xdd8] sm:$0xff] %v468_v59  ;;  %v532_v59 = vld [vmem:[#allocation2 + $0xfd8] sm:$0xff] }
 0x1c3   :  { %981 = vst [vmem:[#allocation5 + $0xde0] sm:$0xff] %v469_v60  ;;  %v533_v60 = vld [vmem:[#allocation2 + $0xfe0] sm:$0xff] }
 0x1c4   :  { %982 = vst [vmem:[#allocation5 + $0xde8] sm:$0xff] %v470_v61  ;;  %v534_v61 = vld [vmem:[#allocation2 + $0xfe8] sm:$0xff] }
 0x1c5   :  { %983 = vst [vmem:[#allocation5 + $0xdf0] sm:$0xff] %v471_v62  ;;  %v535_v62 = vld [vmem:[#allocation2 + $0xff0] sm:$0xff] }
 0x1c6   :  { %984 = vst [vmem:[#allocation5 + $0xdf8] sm:$0xff] %v472_v63  ;;  %v536_v63 = vld [vmem:[#allocation2 + $0xff8] sm:$0xff] }
 0x1c7   :  { %985 = vst [vmem:[#allocation5 + $0xe00] sm:$0xff] %v473_v0 }
 0x1c8   :  { %986 = vst [vmem:[#allocation5 + $0xe08] sm:$0xff] %v474_v1 }
 0x1c9   :  { %987 = vst [vmem:[#allocation5 + $0xe10] sm:$0xff] %v475_v2 }
 0x1ca   :  { %988 = vst [vmem:[#allocation5 + $0xe18] sm:$0xff] %v476_v3 }
 0x1cb   :  { %989 = vst [vmem:[#allocation5 + $0xe20] sm:$0xff] %v477_v4 }
 0x1cc   :  { %990 = vst [vmem:[#allocation5 + $0xe28] sm:$0xff] %v478_v5 }
 0x1cd   :  { %991 = vst [vmem:[#allocation5 + $0xe30] sm:$0xff] %v479_v6 }
 0x1ce   :  { %992 = vst [vmem:[#allocation5 + $0xe38] sm:$0xff] %v480_v7 }
 0x1cf   :  { %993 = vst [vmem:[#allocation5 + $0xe40] sm:$0xff] %v481_v8 }
 0x1d0   :  { %994 = vst [vmem:[#allocation5 + $0xe48] sm:$0xff] %v482_v9 }
 0x1d1   :  { %995 = vst [vmem:[#allocation5 + $0xe50] sm:$0xff] %v483_v10 }
 0x1d2   :  { %996 = vst [vmem:[#allocation5 + $0xe58] sm:$0xff] %v484_v11 }
 0x1d3   :  { %997 = vst [vmem:[#allocation5 + $0xe60] sm:$0xff] %v485_v12 }
 0x1d4   :  { %998 = vst [vmem:[#allocation5 + $0xe68] sm:$0xff] %v486_v13 }
 0x1d5   :  { %999 = vst [vmem:[#allocation5 + $0xe70] sm:$0xff] %v487_v14 }
 0x1d6   :  { %1000 = vst [vmem:[#allocation5 + $0xe78] sm:$0xff] %v488_v15 }
 0x1d7   :  { %1001 = vst [vmem:[#allocation5 + $0xe80] sm:$0xff] %v489_v16 }
 0x1d8   :  { %1002 = vst [vmem:[#allocation5 + $0xe88] sm:$0xff] %v490_v17 }
 0x1d9   :  { %1003 = vst [vmem:[#allocation5 + $0xe90] sm:$0xff] %v491_v18 }
 0x1da   :  { %1004 = vst [vmem:[#allocation5 + $0xe98] sm:$0xff] %v492_v19 }
 0x1db   :  { %1005 = vst [vmem:[#allocation5 + $0xea0] sm:$0xff] %v493_v20 }
 0x1dc   :  { %1006 = vst [vmem:[#allocation5 + $0xea8] sm:$0xff] %v494_v21 }
 0x1dd   :  { %1007 = vst [vmem:[#allocation5 + $0xeb0] sm:$0xff] %v495_v22 }
 0x1de   :  { %1008 = vst [vmem:[#allocation5 + $0xeb8] sm:$0xff] %v496_v23 }
 0x1df   :  { %1009 = vst [vmem:[#allocation5 + $0xec0] sm:$0xff] %v497_v24 }
 0x1e0   :  { %1010 = vst [vmem:[#allocation5 + $0xec8] sm:$0xff] %v498_v25 }
 0x1e1   :  { %1011 = vst [vmem:[#allocation5 + $0xed0] sm:$0xff] %v499_v26 }
 0x1e2   :  { %1012 = vst [vmem:[#allocation5 + $0xed8] sm:$0xff] %v500_v27 }
 0x1e3   :  { %1013 = vst [vmem:[#allocation5 + $0xee0] sm:$0xff] %v501_v28 }
 0x1e4   :  { %1014 = vst [vmem:[#allocation5 + $0xee8] sm:$0xff] %v502_v29 }
 0x1e5   :  { %1015 = vst [vmem:[#allocation5 + $0xef0] sm:$0xff] %v503_v30 }
 0x1e6   :  { %1016 = vst [vmem:[#allocation5 + $0xef8] sm:$0xff] %v504_v31 }
 0x1e7   :  { %1017 = vst [vmem:[#allocation5 + $0xf00] sm:$0xff] %v505_v32 }
 0x1e8   :  { %1018 = vst [vmem:[#allocation5 + $0xf08] sm:$0xff] %v506_v33 }
 0x1e9   :  { %1019 = vst [vmem:[#allocation5 + $0xf10] sm:$0xff] %v507_v34 }
 0x1ea   :  { %1020 = vst [vmem:[#allocation5 + $0xf18] sm:$0xff] %v508_v35 }
 0x1eb   :  { %1021 = vst [vmem:[#allocation5 + $0xf20] sm:$0xff] %v509_v36 }
 0x1ec   :  { %1022 = vst [vmem:[#allocation5 + $0xf28] sm:$0xff] %v510_v37 }
 0x1ed   :  { %1023 = vst [vmem:[#allocation5 + $0xf30] sm:$0xff] %v511_v38 }
 0x1ee   :  { %1024 = vst [vmem:[#allocation5 + $0xf38] sm:$0xff] %v512_v39 }
 0x1ef   :  { %1025 = vst [vmem:[#allocation5 + $0xf40] sm:$0xff] %v513_v40 }
 0x1f0   :  { %1026 = vst [vmem:[#allocation5 + $0xf48] sm:$0xff] %v514_v41 }
 0x1f1   :  { %1027 = vst [vmem:[#allocation5 + $0xf50] sm:$0xff] %v515_v42 }
 0x1f2   :  { %1028 = vst [vmem:[#allocation5 + $0xf58] sm:$0xff] %v516_v43 }
 0x1f3   :  { %1029 = vst [vmem:[#allocation5 + $0xf60] sm:$0xff] %v517_v44 }
 0x1f4   :  { %1030 = vst [vmem:[#allocation5 + $0xf68] sm:$0xff] %v518_v45 }
 0x1f5   :  { %1031 = vst [vmem:[#allocation5 + $0xf70] sm:$0xff] %v519_v46 }
 0x1f6   :  { %1032 = vst [vmem:[#allocation5 + $0xf78] sm:$0xff] %v520_v47 }
 0x1f7   :  { %1033 = vst [vmem:[#allocation5 + $0xf80] sm:$0xff] %v521_v48 }
 0x1f8   :  { %1034 = vst [vmem:[#allocation5 + $0xf88] sm:$0xff] %v522_v49 }
 0x1f9   :  { %1035 = vst [vmem:[#allocation5 + $0xf90] sm:$0xff] %v523_v50 }
 0x1fa   :  { %1036 = vst [vmem:[#allocation5 + $0xf98] sm:$0xff] %v524_v51 }
 0x1fb   :  { %1037 = vst [vmem:[#allocation5 + $0xfa0] sm:$0xff] %v525_v52 }
 0x1fc   :  { %1038 = vst [vmem:[#allocation5 + $0xfa8] sm:$0xff] %v526_v53 }
 0x1fd   :  { %1039 = vst [vmem:[#allocation5 + $0xfb0] sm:$0xff] %v527_v54 }
 0x1fe   :  { %1040 = vst [vmem:[#allocation5 + $0xfb8] sm:$0xff] %v528_v55 }
 0x1ff   :  { %1041 = vst [vmem:[#allocation5 + $0xfc0] sm:$0xff] %v529_v56 }
 0x200   :  { %1042 = vst [vmem:[#allocation5 + $0xfc8] sm:$0xff] %v530_v57 }
 0x201   :  { %1043 = vst [vmem:[#allocation5 + $0xfd0] sm:$0xff] %v531_v58 }
 0x202   :  { %1044 = vst [vmem:[#allocation5 + $0xfd8] sm:$0xff] %v532_v59 }
 0x203   :  { %1045 = vst [vmem:[#allocation5 + $0xfe0] sm:$0xff] %v533_v60 }
 0x204   :  { %1046 = vst [vmem:[#allocation5 + $0xfe8] sm:$0xff] %v534_v61 }
 0x205   :  { %1047 = vst [vmem:[#allocation5 + $0xff0] sm:$0xff] %v535_v62 }
 0x206   :  { %1048 = vst [vmem:[#allocation5 + $0xff8] sm:$0xff] %v536_v63 }
 0x207   :  { %1061 = dma.vmem_to_hbm [thread:$0]  %s1054_s13, 65536, %s1056_s16, [#allocation4], %s1125_s11, %s1125_s11, %s1126_s12  }
 0x208   :  { %1122 = dma.done.wait [#allocation4], 65536  }
 0x209   :  { %1123 = vsyncadd [#allocation4], 4294901760 }
 0x20a   :  { %1066 = vsyncpa [#allocation3], 1 }
 0x20b   :  { %1067 = vsyncpa [#allocation4], 1 }

</bundles_post_ra>
